<compile_context>
chip_gen: v7x
topology: tpu7x:2x2x1
jax: 0.10.0
libtpu: 0.0.40
codegen_flags: <defaults>
</compile_context>

<pallas_src>
import functools

import jax
import jax.numpy as jnp
import numpy as np
from jax.experimental import pallas as pl
from jax.experimental.pallas import tpu as pltpu


def _round_up(x, m):
    return ((x + m - 1) // m) * m


# ----------------------------------------------------------------------------
# Pallas kernel: one grid step == one decode step t in range(seq_len - 1)
# ----------------------------------------------------------------------------
def _symbol_generate_kernel(
    vid_gate_ref,   # [Bp, 4H] f32 : vid_feats @ W_ih[vid]^T + b_ih + b_hh (hoisted)
    h0_ref,         # [Bp, H]  f32 : h0_embed(vid_feats)                    (hoisted)
    c0_ref,         # [Bp, H]  f32 : c0_embed(vid_feats)                    (hoisted)
    xt0_ref,        # [Bp, H]  f32 : w_embed(embedding(<sos>)) broadcast    (hoisted)
    outb_ref,       # [1, Vp]  f32 : out_embed bias, padded cols = -1e30 (keep f32!)
    wxh_hbm,        # [2H, 4H] wdt : [W_ih[x]^T ; W_hh^T] fused gate weight (HBM)
    outw_hbm,       # [H, Vp]  wdt : out_embed weight^T                     (HBM)
    xtab_hbm,       # [Vp, H]  f32 : fused embedding@w_embed^T + b table    (HBM only)
    probs_ref,      # out [1, Bp, Vp] f32 : time-major log-softmax
    sent_ref,       # out [Bp, H]     f32 : mean of hidden states
    h_sc, c_sc, xt_sc, hsum_sc,        # VMEM scratch [Bp, H] f32
    wxh_sc,         # VMEM scratch [2H, 4H] wdt (single-buffered, loaded once)
    outw_sc,        # VMEM scratch [H, Vp]  wdt (single-buffered, loaded once)
    lsem,           # DMA sems (2,)  : one-time weight loads
    gsem,           # DMA sems (Bp,) : per-row token gather
    idx_smem,       # SMEM (Bp,) int32 : greedy token indices
    *, inv_steps,
):
    t = pl.program_id(0)
    n_steps = pl.num_programs(0)
    Bp, H = h_sc.shape
    Vp = outw_sc.shape[1]
    wdt = outw_sc.dtype

    # ---- one-time: kick off resident-weight loads, overlapped with step-0 math ----
    @pl.when(t == 0)
    def _init():
        pltpu.make_async_copy(wxh_hbm, wxh_sc, lsem.at[0]).start()
        pltpu.make_async_copy(outw_hbm, outw_sc, lsem.at[1]).start()
        h_sc[...] = h0_ref[...]
        c_sc[...] = c0_ref[...]
        xt_sc[...] = xt0_ref[...]
        hsum_sc[...] = jnp.zeros_like(hsum_sc)

    # ---- wait for the previous step's token-row gather DMAs (started at t-1) ----
    @pl.when(t > 0)
    def _wait_gather():
        for b in range(Bp):
            pltpu.make_async_copy(xtab_hbm.at[pl.ds(0, 1)],
                                  xt_sc.at[pl.ds(b, 1)], gsem.at[b]).wait()

    @pl.when(t == 0)
    def _wait_wxh():
        pltpu.make_async_copy(wxh_hbm, wxh_sc, lsem.at[0]).wait()

    # ---- LSTMCell on cat([x_t, vid_feats]); vid part + biases hoisted (vid_gate) ----
    # Split gate matmul (x@Wx + h@Wh) instead of concatenating per step.
    xt_w = xt_sc[...].astype(wdt)
    h_w = h_sc[...].astype(wdt)
    gates = (
        jnp.dot(xt_w, wxh_sc[pl.ds(0, H), :], preferred_element_type=jnp.float32)
        + jnp.dot(h_w, wxh_sc[pl.ds(H, H), :], preferred_element_type=jnp.float32)
        + vid_gate_ref[...]
    )
    i_g = jax.nn.sigmoid(gates[:, 0 * H:1 * H])
    f_g = jax.nn.sigmoid(gates[:, 1 * H:2 * H])
    g_g = jnp.tanh(gates[:, 2 * H:3 * H])
    o_g = jax.nn.sigmoid(gates[:, 3 * H:4 * H])
    c_new = f_g * c_sc[...] + i_g * g_g
    h_new = o_g * jnp.tanh(c_new)
    h_sc[...] = h_new
    c_sc[...] = c_new
    hsum_sc[...] = hsum_sc[...] + h_new

    @pl.when(t == 0)
    def _wait_outw():
        pltpu.make_async_copy(outw_hbm, outw_sc, lsem.at[1]).wait()

    # ---- out_embed + log_softmax (f32 math; wdt only as the MXU operand dtype) ----
    logits = (
        jnp.dot(h_new.astype(wdt), outw_sc[...], preferred_element_type=jnp.float32)
        + outb_ref[...]
    )
    mx = jnp.max(logits, axis=-1, keepdims=True)          # reused by the argmax below
    shifted = logits - mx
    logprobs = shifted - jnp.log(jnp.sum(jnp.exp(shifted), axis=-1, keepdims=True))
    probs_ref[0] = logprobs

    # ---- greedy sampling: it = argmax(logits) (== argmax(logprobs)), row gather ----
    # Next x_t rows are DMA-gathered from the fused table in HBM; waited at t+1.
    @pl.when(t < n_steps - 1)
    def _next_token():
        iota = jax.lax.broadcasted_iota(jnp.int32, (Bp, Vp), 1)
        it_kd = jnp.min(jnp.where(logits == mx, iota, Vp), axis=-1, keepdims=True)
        row_iota = jax.lax.broadcasted_iota(jnp.int32, (Bp, 1), 0)
        for b in range(Bp):
            idx_smem[b] = jnp.max(jnp.where(row_iota == b, it_kd, 0))
        for b in range(Bp):
            pltpu.make_async_copy(xtab_hbm.at[pl.ds(idx_smem[b], 1)],
                                  xt_sc.at[pl.ds(b, 1)], gsem.at[b]).start()

    # sent_embeds = mean over time of hidden states (written once, at the end)
    @pl.when(t == n_steps - 1)
    def _finalize():
        sent_ref[...] = hsum_sc[...] * inv_steps


# ----------------------------------------------------------------------------
# Wrapper-side preparation (all time-invariant work happens here, once)
# ----------------------------------------------------------------------------
def prepare_inputs(vid_feats, params, weight_dtype):
    f32 = jnp.float32
    B, H = vid_feats.shape
    V, word_dim = params["embedding"].shape
    Bp = max(8, _round_up(B, 8))          # sublane-dense batch
    Vp = _round_up(V, 128)                # lane-dense vocab

    vid = jnp.zeros((Bp, H), f32).at[:B].set(vid_feats.astype(f32))

    # init_hidden (hoisted)
    h0 = vid @ params["h0_W"].T.astype(f32) + params["h0_b"].astype(f32)
    c0 = vid @ params["c0_W"].T.astype(f32) + params["c0_b"].astype(f32)

    # LSTM weights: hoist the vid part (+ both biases) into a per-batch constant,
    # fuse the x|h weights into one [2H, 4H] matrix (kernel slices it statically).
    WihT = params["lstm_Wih"].T.astype(f32)                 # [2H, 4H]
    WihxT, WihvT = WihT[:H], WihT[H:]
    bias = (params["lstm_bih"] + params["lstm_bhh"]).astype(f32)
    vid_gate = vid @ WihvT + bias[None, :]                  # [Bp, 4H]
    WhhT = params["lstm_Whh"].T.astype(f32)                 # [H, 4H]
    wxh = jnp.concatenate([WihxT, WhhT], axis=0).astype(weight_dtype)   # [2H, 4H]

    # Fused embedding -> w_embed table; stays f32 and HBM-resident (rows are
    # gathered by DMA each step, f32 keeps the row copy sublane-clean).
    emb = params["embedding"].astype(f32)                   # [V, word_dim]
    xt_table = emb @ params["w_W"].T.astype(f32) + params["w_b"].astype(f32)  # [V, H]
    xt_table_p = jnp.zeros((Vp, H), f32).at[:V].set(xt_table)

    # <sos> x_t (row 0 of the fused table), broadcast over the (padded) batch.
    xt0 = jnp.broadcast_to(xt_table_p[0:1], (Bp, H))

    # out_embed, vocab-padded; padded columns get a very negative bias so they
    # never win the argmax and do not perturb the log-softmax of real columns.
    # NOTE: outb must stay f32 — a bf16 cast would turn -1e30 into -inf -> NaNs.
    outW = params["out_W"].T.astype(f32)                    # [H, V]
    outW_p = jnp.zeros((H, Vp), f32).at[:, :V].set(outW).astype(weight_dtype)
    outb_p = jnp.full((1, Vp), -1e30, f32).at[0, :V].set(params["out_b"].astype(f32))

    return dict(B=B, H=H, V=V, Bp=Bp, Vp=Vp,
                vid_gate=vid_gate, h0=h0, c0=c0, xt0=xt0,
                wxh=wxh, outb=outb_p, outw=outW_p, xt_table=xt_table_p)


def _vmem_limit_bytes(prep):
    """Scoped-VMEM budget computed from the prepared shapes (not a constant)."""
    Bp, H, Vp = prep["Bp"], prep["H"], prep["Vp"]
    wsz = prep["wxh"].dtype.itemsize
    f32 = 4
    scratch = (4 * Bp * H * f32            # h, c, xt, hsum
               + 2 * H * 4 * H * wsz       # wxh_sc (single-buffered)
               + H * Vp * wsz)             # outw_sc (single-buffered)
    blocks = 2 * (Bp * 4 * H * f32 + 3 * Bp * H * f32 + Vp * f32   # dense inputs
                  + Bp * Vp * f32 + Bp * H * f32)                  # outputs
    total = int((scratch + blocks) * 1.2) + (4 << 20)
    return min(max(total, 32 << 20), 120 << 20)


def _decode_pallas(prep, seq_len):
    Bp, H, Vp = prep["Bp"], prep["H"], prep["Vp"]
    T1 = seq_len - 1
    wdt = prep["wxh"].dtype

    dense_inputs = (prep["vid_gate"], prep["h0"], prep["c0"], prep["xt0"], prep["outb"])
    any_inputs = (prep["wxh"], prep["outw"], prep["xt_table"])

    def full_spec(arr):
        nd = arr.ndim
        return pl.BlockSpec(arr.shape, lambda t, _n=nd: (0,) * _n)

    in_specs = ([full_spec(a) for a in dense_inputs]
                + [pl.BlockSpec(memory_space=pl.ANY) for _ in any_inputs])

    kernel = functools.partial(_symbol_generate_kernel, inv_steps=1.0 / float(T1))

    probs_tm, sent = pl.pallas_call(
        kernel,
        out_shape=(
            jax.ShapeDtypeStruct((T1, Bp, Vp), jnp.float32),   # time-major logprobs
            jax.ShapeDtypeStruct((Bp, H), jnp.float32),        # sent_embeds
        ),
        grid_spec=pltpu.PrefetchScalarGridSpec(
            num_scalar_prefetch=0,
            grid=(T1,),
            in_specs=in_specs,
            out_specs=(
                pl.BlockSpec((1, Bp, Vp), lambda t: (t, 0, 0)),
                pl.BlockSpec((Bp, H), lambda t: (0, 0)),
            ),
            scratch_shapes=[
                pltpu.VMEM((Bp, H), jnp.float32),     # h
                pltpu.VMEM((Bp, H), jnp.float32),     # c
                pltpu.VMEM((Bp, H), jnp.float32),     # x_t (gathered rows, f32)
                pltpu.VMEM((Bp, H), jnp.float32),     # running sum of hidden states
                pltpu.VMEM((2 * H, 4 * H), wdt),      # fused gate weight (loaded once)
                pltpu.VMEM((H, Vp), wdt),             # out_embed weight (loaded once)
                pltpu.SemaphoreType.DMA((2,)),        # one-time weight loads
                pltpu.SemaphoreType.DMA((Bp,)),       # per-row token gather
                pltpu.SMEM((Bp,), jnp.int32),         # greedy token indices
            ],
        ),
        compiler_params=pltpu.CompilerParams(
            dimension_semantics=("arbitrary",),       # sequential recurrence over time
            vmem_limit_bytes=_vmem_limit_bytes(prep),
        ),
    )(*dense_inputs, *any_inputs)
    return probs_tm, sent


def symbol_generate_forward(vid_feats, targets, params, *, seq_len,
                            weight_dtype=jnp.bfloat16):
    """Train-mode forward: returns (probs_train [B, T-1, V], sent_embeds [B, H]).

    `targets` is accepted for signature fidelity; with the default p=0.0 the
    teacher-forcing branch (and hence targets_emb) never influences the output.
    """
    del targets  # unused for p=0.0 (teacher forcing never taken)
    prep = prepare_inputs(vid_feats, params, weight_dtype)
    probs_tm, sent = _decode_pallas(prep, seq_len)
    B, V = prep["B"], prep["V"]
    probs_train = jnp.transpose(probs_tm, (1, 0, 2))[:B, :, :V]   # [B, T-1, V]
    sent_embeds = sent[:B]
    return probs_train, sent_embeds


# ----------------------------------------------------------------------------
# Deterministic parameter init (shapes mirror the module, scaled down)
# ----------------------------------------------------------------------------
def init_params(key, *, hidden, word_dim, vocab):
    keys = jax.random.split(key, 6)

    def linear(k, fin, fout):
        kw, kb = jax.random.split(k)
        bound = 1.0 / np.sqrt(fin)
        W = jax.random.uniform(kw, (fout, fin), jnp.float32, -bound, bound)
        b = jax.random.uniform(kb, (fout,), jnp.float32, -bound, bound)
        return W, b

    h0_W, h0_b = linear(keys[0], hidden, hidden)        # h0_embed
    c0_W, c0_b = linear(keys[1], hidden, hidden)        # c0_embed
    w_W, w_b = linear(keys[2], word_dim, hidden)        # w_embed
    out_W, out_b = linear(keys[3], hidden, vocab)       # out_embed
    embedding = jax.random.normal(keys[4], (vocab, word_dim), jnp.float32)

    bound = 1.0 / np.sqrt(hidden)
    ka, kb, kc, kd = jax.random.split(keys[5], 4)
    lstm_Wih = jax.random.uniform(ka, (4 * hidden, 2 * hidden), jnp.float32, -bound, bound)
    lstm_Whh = jax.random.uniform(kb, (4 * hidden, hidden), jnp.float32, -bound, bound)
    lstm_bih = jax.random.uniform(kc, (4 * hidden,), jnp.float32, -bound, bound)
    lstm_bhh = jax.random.uniform(kd, (4 * hidden,), jnp.float32, -bound, bound)

    return dict(
        h0_W=h0_W, h0_b=h0_b, c0_W=c0_W, c0_b=c0_b,
        w_W=w_W, w_b=w_b, out_W=out_W, out_b=out_b,
        embedding=embedding,
        lstm_Wih=lstm_Wih, lstm_Whh=lstm_Whh, lstm_bih=lstm_bih, lstm_bhh=lstm_bhh,
    )


# ----------------------------------------------------------------------------
# Pure-JAX references
# ----------------------------------------------------------------------------
def reference_forward(vid_feats, params, seq_len):
    """Module-faithful f32 reference (mirrors the PyTorch train forward, p=0.0)."""
    B = vid_feats.shape[0]
    h = vid_feats @ params["h0_W"].T + params["h0_b"]
    c = vid_feats @ params["c0_W"].T + params["c0_b"]
    emb = params["embedding"]

    def w_embed(x):
        return x @ params["w_W"].T + params["w_b"]

    probs, hiddens = [], []
    logprobs = None
    for t in range(seq_len - 1):
        if t == 0:
            it = jnp.zeros((B,), jnp.int32)
        else:
            it = jnp.argmax(logprobs, axis=1)
        xt = w_embed(emb[it])
        inp = jnp.concatenate([xt, vid_feats], axis=1)
        gates = (inp @ params["lstm_Wih"].T + params["lstm_bih"]
                 + h @ params["lstm_Whh"].T + params["lstm_bhh"])
        i_g, f_g, g_g, o_g = jnp.split(gates, 4, axis=1)
        i_g, f_g, o_g = jax.nn.sigmoid(i_g), jax.nn.sigmoid(f_g), jax.nn.sigmoid(o_g)
        g_g = jnp.tanh(g_g)
        c = f_g * c + i_g * g_g
        h = o_g * jnp.tanh(c)
        hiddens.append(h)
        logits = h @ params["out_W"].T + params["out_b"]
        logprobs = jax.nn.log_softmax(logits, axis=1)
        probs.append(logprobs)
    probs_train = jnp.stack(probs, axis=1)
    sent_embeds = jnp.mean(jnp.stack(hiddens, axis=1), axis=1)
    return probs_train, sent_embeds


def reference_from_prep(prep, seq_len):
    """Same recurrence, in plain JAX, on the prepared (cast/padded) params.

    Mirrors the kernel exactly (split gate dots, argmax on logits, manual
    log_softmax) so the greedy token sequence matches at matched precision.
    """
    f32 = jnp.float32
    wdt = prep["wxh"].dtype
    H = prep["H"]
    wx, wh = prep["wxh"][:H], prep["wxh"][H:]
    h, c, xt = prep["h0"], prep["c0"], prep["xt0"]
    probs, hiddens = [], []
    logits = None
    for t in range(seq_len - 1):
        if t > 0:
            it = jnp.argmax(logits, axis=1)
            xt = prep["xt_table"][it]
        gates = (jnp.dot(xt.astype(wdt), wx, preferred_element_type=f32)
                 + jnp.dot(h.astype(wdt), wh, preferred_element_type=f32)
                 + prep["vid_gate"])
        i_g, f_g, g_g, o_g = jnp.split(gates, 4, axis=1)
        i_g, f_g, o_g = jax.nn.sigmoid(i_g), jax.nn.sigmoid(f_g), jax.nn.sigmoid(o_g)
        g_g = jnp.tanh(g_g)
        c = f_g * c + i_g * g_g
        h = o_g * jnp.tanh(c)
        hiddens.append(h)
        logits = jnp.dot(h.astype(wdt), prep["outw"], preferred_element_type=f32) \
            + prep["outb"]
        mx = jnp.max(logits, axis=1, keepdims=True)
        shifted = logits - mx
        logprobs = shifted - jnp.log(jnp.sum(jnp.exp(shifted), axis=1, keepdims=True))
        probs.append(logprobs)
    probs_train = jnp.stack(probs, axis=1)
    sent_embeds = jnp.mean(jnp.stack(hiddens, axis=1), axis=1)
    B, V = prep["B"], prep["V"]
    return probs_train[:B, :, :V], sent_embeds[:B]


if __name__ == "__main__":
    # Small shapes consistent with the module structure
    # (module: hidden=1024, word_dim=300, vocab=10510, seq_len=30; scaled down here).
    B, H, WD, V, T = 2, 64, 32, 100, 8

    key = jax.random.PRNGKey(0)
    kp, kv, kt = jax.random.split(key, 3)
    params = init_params(kp, hidden=H, word_dim=WD, vocab=V)
    vid_feats = jax.random.normal(kv, (B, H), jnp.float32)
    targets = jax.random.randint(kt, (B, T), 0, V)   # unused with p=0.0

    # ---- check 1: f32 kernel vs. module-faithful f32 reference ----
    probs_f32, sent_f32 = symbol_generate_forward(
        vid_feats, targets, params, seq_len=T, weight_dtype=jnp.float32)
    jax.block_until_ready((probs_f32, sent_f32))
    assert probs_f32.shape == (B, T - 1, V)
    assert sent_f32.shape == (B, H)
    ref_p, ref_s = reference_forward(vid_feats, params, T)
    np.testing.assert_allclose(np.asarray(probs_f32), np.asarray(ref_p),
                               rtol=2e-3, atol=2e-3)
    np.testing.assert_allclose(np.asarray(sent_f32), np.asarray(ref_s),
                               rtol=2e-3, atol=2e-3)

    # ---- check 2: default (bf16-weight) kernel vs. matched-precision reference ----
    probs_bf, sent_bf = symbol_generate_forward(vid_feats, targets, params, seq_len=T)
    jax.block_until_ready((probs_bf, sent_bf))
    assert probs_bf.shape == (B, T - 1, V)
    assert sent_bf.shape == (B, H)
    prep = prepare_inputs(vid_feats, params, jnp.bfloat16)
    ref_p2, ref_s2 = reference_from_prep(prep, T)
    np.testing.assert_allclose(np.asarray(probs_bf), np.asarray(ref_p2),
                               rtol=2e-3, atol=2e-3)
    np.testing.assert_allclose(np.asarray(sent_bf), np.asarray(ref_s2),
                               rtol=2e-3, atol=2e-3)

    print("KERNEL_OK")
</pallas_src>

<mosaic_0001>
module attributes {stable_mosaic.version = 11 : i64} {
  func.func @_symbol_generate_kernel(%arg0: i32, %arg1: memref<8x256xf32, #tpu.memory_space<vmem>>, %arg2: memref<8x64xf32, #tpu.memory_space<vmem>>, %arg3: memref<8x64xf32, #tpu.memory_space<vmem>>, %arg4: memref<8x64xf32, #tpu.memory_space<vmem>>, %arg5: memref<1x128xf32, #tpu.memory_space<vmem>>, %arg6: memref<128x256xf32, #tpu.memory_space<any>>, %arg7: memref<64x128xf32, #tpu.memory_space<any>>, %arg8: memref<128x64xf32, #tpu.memory_space<any>>, %arg9: memref<1x8x128xf32, #tpu.memory_space<vmem>>, %arg10: memref<8x64xf32, #tpu.memory_space<vmem>>, %arg11: memref<8x64xf32, #tpu.memory_space<vmem>>, %arg12: memref<8x64xf32, #tpu.memory_space<vmem>>, %arg13: memref<8x64xf32, #tpu.memory_space<vmem>>, %arg14: memref<8x64xf32, #tpu.memory_space<vmem>>, %arg15: memref<128x256xf32, #tpu.memory_space<vmem>>, %arg16: memref<64x128xf32, #tpu.memory_space<vmem>>, %arg17: memref<2x!tpu.dma_semaphore, #tpu.memory_space<semaphore_mem>>, %arg18: memref<8x!tpu.dma_semaphore, #tpu.memory_space<semaphore_mem>>, %arg19: memref<8xi32, #tpu.memory_space<smem>>) attributes {dimension_semantics = [#tpu.dimension_semantics<arbitrary>], iteration_bounds = array<i64: 7>, scalar_prefetch = 0 : i64, scratch_operands = 9 : i64, tpu.core_type = #tpu.core_type<tc>, window_params = [{pipeline_mode = #tpu.pipeline_mode<synchronous>, transform_indices = @transform_0, window_bounds = array<i64: 8, 256>}, {pipeline_mode = #tpu.pipeline_mode<synchronous>, transform_indices = @transform_1, window_bounds = array<i64: 8, 64>}, {pipeline_mode = #tpu.pipeline_mode<synchronous>, transform_indices = @transform_2, window_bounds = array<i64: 8, 64>}, {pipeline_mode = #tpu.pipeline_mode<synchronous>, transform_indices = @transform_3, window_bounds = array<i64: 8, 64>}, {pipeline_mode = #tpu.pipeline_mode<synchronous>, transform_indices = @transform_4, window_bounds = array<i64: 1, 128>}, {}, {}, {}, {transform_indices = @transform_8, window_bounds = array<i64: 1, 8, 128>}, {pipeline_mode = #tpu.pipeline_mode<synchronous>, transform_indices = @transform_9, window_bounds = array<i64: 8, 64>}]} {
    %c0_i32 = arith.constant 0 : i32
    %0 = arith.cmpi eq, %arg0, %c0_i32 : i32
    %1 = arith.extui %0 : i1 to i32
    %c0_i32_0 = arith.constant 0 : i32
    %2 = arith.cmpi ne, %1, %c0_i32_0 : i32
    scf.if %2 {
      %c0_i32_42 = arith.constant 0 : i32
      %76 = tpu.memref_slice %arg17[%c0_i32_42] : memref<2x!tpu.dma_semaphore, #tpu.memory_space<semaphore_mem>> -> memref<1x!tpu.dma_semaphore, #tpu.memory_space<semaphore_mem>>
      %77 = tpu.memref_squeeze %76 : memref<1x!tpu.dma_semaphore, #tpu.memory_space<semaphore_mem>> -> memref<!tpu.dma_semaphore, #tpu.memory_space<semaphore_mem>>
      tpu.enqueue_dma source(%arg6 : memref<128x256xf32, #tpu.memory_space<any>>) target(%arg15 : memref<128x256xf32, #tpu.memory_space<vmem>>) target_semaphore(%77 : memref<!tpu.dma_semaphore, #tpu.memory_space<semaphore_mem>>)
      %c1_i32 = arith.constant 1 : i32
      %78 = tpu.memref_slice %arg17[%c1_i32] : memref<2x!tpu.dma_semaphore, #tpu.memory_space<semaphore_mem>> -> memref<1x!tpu.dma_semaphore, #tpu.memory_space<semaphore_mem>>
      %79 = tpu.memref_squeeze %78 : memref<1x!tpu.dma_semaphore, #tpu.memory_space<semaphore_mem>> -> memref<!tpu.dma_semaphore, #tpu.memory_space<semaphore_mem>>
      tpu.enqueue_dma source(%arg7 : memref<64x128xf32, #tpu.memory_space<any>>) target(%arg16 : memref<64x128xf32, #tpu.memory_space<vmem>>) target_semaphore(%79 : memref<!tpu.dma_semaphore, #tpu.memory_space<semaphore_mem>>)
      %c0_43 = arith.constant 0 : index
      %c0_44 = arith.constant 0 : index
      %80 = vector.load %arg2[%c0_43, %c0_44] : memref<8x64xf32, #tpu.memory_space<vmem>>, vector<8x64xf32>
      %c0_45 = arith.constant 0 : index
      %c0_46 = arith.constant 0 : index
      %81 = vector.load %arg11[%c0_45, %c0_46] : memref<8x64xf32, #tpu.memory_space<vmem>>, vector<8x64xf32>
      tpu.vector_store %arg11[%c0_45, %c0_46], %80 {strides = array<i32>} : memref<8x64xf32, #tpu.memory_space<vmem>>, vector<8x64xf32>,
      %c0_47 = arith.constant 0 : index
      %c0_48 = arith.constant 0 : index
      %82 = vector.load %arg3[%c0_47, %c0_48] : memref<8x64xf32, #tpu.memory_space<vmem>>, vector<8x64xf32>
      %c0_49 = arith.constant 0 : index
      %c0_50 = arith.constant 0 : index
      %83 = vector.load %arg12[%c0_49, %c0_50] : memref<8x64xf32, #tpu.memory_space<vmem>>, vector<8x64xf32>
      tpu.vector_store %arg12[%c0_49, %c0_50], %82 {strides = array<i32>} : memref<8x64xf32, #tpu.memory_space<vmem>>, vector<8x64xf32>,
      %c0_51 = arith.constant 0 : index
      %c0_52 = arith.constant 0 : index
      %84 = vector.load %arg4[%c0_51, %c0_52] : memref<8x64xf32, #tpu.memory_space<vmem>>, vector<8x64xf32>
      %c0_53 = arith.constant 0 : index
      %c0_54 = arith.constant 0 : index
      %85 = vector.load %arg13[%c0_53, %c0_54] : memref<8x64xf32, #tpu.memory_space<vmem>>, vector<8x64xf32>
      tpu.vector_store %arg13[%c0_53, %c0_54], %84 {strides = array<i32>} : memref<8x64xf32, #tpu.memory_space<vmem>>, vector<8x64xf32>,
      %cst_55 = arith.constant 0.000000e+00 : f32
      %86 = vector.broadcast %cst_55 : f32 to vector<8x64xf32>
      %c0_56 = arith.constant 0 : index
      %c0_57 = arith.constant 0 : index
      %87 = vector.load %arg14[%c0_56, %c0_57] : memref<8x64xf32, #tpu.memory_space<vmem>>, vector<8x64xf32>
      tpu.vector_store %arg14[%c0_56, %c0_57], %86 {strides = array<i32>} : memref<8x64xf32, #tpu.memory_space<vmem>>, vector<8x64xf32>,
    } else {
    }
    %c0_i32_1 = arith.constant 0 : i32
    %3 = arith.cmpi sgt, %arg0, %c0_i32_1 : i32
    %4 = arith.extui %3 : i1 to i32
    %c0_i32_2 = arith.constant 0 : i32
    %5 = arith.cmpi ne, %4, %c0_i32_2 : i32
    scf.if %5 {
      %c0_i32_42 = arith.constant 0 : i32
      %c0_i32_43 = arith.constant 0 : i32
      %c0_i32_44 = arith.constant 0 : i32
      %76 = tpu.memref_slice %arg8[%c0_i32_43, %c0_i32_44] : memref<128x64xf32, #tpu.memory_space<any>> -> memref<1x64xf32, #tpu.memory_space<any>>
      %c0_i32_45 = arith.constant 0 : i32
      %c0_i32_46 = arith.constant 0 : i32
      %77 = tpu.memref_slice %arg13[%c0_i32_45, %c0_i32_46] : memref<8x64xf32, #tpu.memory_space<vmem>> -> memref<1x64xf32, #tpu.memory_space<vmem>>
      %78 = tpu.memref_slice %arg18[%c0_i32_42] : memref<8x!tpu.dma_semaphore, #tpu.memory_space<semaphore_mem>> -> memref<1x!tpu.dma_semaphore, #tpu.memory_space<semaphore_mem>>
      %79 = tpu.memref_squeeze %78 : memref<1x!tpu.dma_semaphore, #tpu.memory_space<semaphore_mem>> -> memref<!tpu.dma_semaphore, #tpu.memory_space<semaphore_mem>>
      tpu.wait_dma2 semaphore(%79 : memref<!tpu.dma_semaphore, #tpu.memory_space<semaphore_mem>>) src(%76 : memref<1x64xf32, #tpu.memory_space<any>>) dst(%77 : memref<1x64xf32, #tpu.memory_space<vmem>>)
      %c1_i32 = arith.constant 1 : i32
      %c0_i32_47 = arith.constant 0 : i32
      %c0_i32_48 = arith.constant 0 : i32
      %80 = tpu.memref_slice %arg8[%c0_i32_47, %c0_i32_48] : memref<128x64xf32, #tpu.memory_space<any>> -> memref<1x64xf32, #tpu.memory_space<any>>
      %c1_i32_49 = arith.constant 1 : i32
      %c0_i32_50 = arith.constant 0 : i32
      %81 = tpu.memref_slice %arg13[%c1_i32_49, %c0_i32_50] : memref<8x64xf32, #tpu.memory_space<vmem>> -> memref<1x64xf32, #tpu.memory_space<vmem>>
      %82 = tpu.memref_slice %arg18[%c1_i32] : memref<8x!tpu.dma_semaphore, #tpu.memory_space<semaphore_mem>> -> memref<1x!tpu.dma_semaphore, #tpu.memory_space<semaphore_mem>>
      %83 = tpu.memref_squeeze %82 : memref<1x!tpu.dma_semaphore, #tpu.memory_space<semaphore_mem>> -> memref<!tpu.dma_semaphore, #tpu.memory_space<semaphore_mem>>
      tpu.wait_dma2 semaphore(%83 : memref<!tpu.dma_semaphore, #tpu.memory_space<semaphore_mem>>) src(%80 : memref<1x64xf32, #tpu.memory_space<any>>) dst(%81 : memref<1x64xf32, #tpu.memory_space<vmem>>)
      %c2_i32 = arith.constant 2 : i32
      %c0_i32_51 = arith.constant 0 : i32
      %c0_i32_52 = arith.constant 0 : i32
      %84 = tpu.memref_slice %arg8[%c0_i32_51, %c0_i32_52] : memref<128x64xf32, #tpu.memory_space<any>> -> memref<1x64xf32, #tpu.memory_space<any>>
      %c2_i32_53 = arith.constant 2 : i32
      %c0_i32_54 = arith.constant 0 : i32
      %85 = tpu.memref_slice %arg13[%c2_i32_53, %c0_i32_54] : memref<8x64xf32, #tpu.memory_space<vmem>> -> memref<1x64xf32, #tpu.memory_space<vmem>>
      %86 = tpu.memref_slice %arg18[%c2_i32] : memref<8x!tpu.dma_semaphore, #tpu.memory_space<semaphore_mem>> -> memref<1x!tpu.dma_semaphore, #tpu.memory_space<semaphore_mem>>
      %87 = tpu.memref_squeeze %86 : memref<1x!tpu.dma_semaphore, #tpu.memory_space<semaphore_mem>> -> memref<!tpu.dma_semaphore, #tpu.memory_space<semaphore_mem>>
      tpu.wait_dma2 semaphore(%87 : memref<!tpu.dma_semaphore, #tpu.memory_space<semaphore_mem>>) src(%84 : memref<1x64xf32, #tpu.memory_space<any>>) dst(%85 : memref<1x64xf32, #tpu.memory_space<vmem>>)
      %c3_i32 = arith.constant 3 : i32
      %c0_i32_55 = arith.constant 0 : i32
      %c0_i32_56 = arith.constant 0 : i32
      %88 = tpu.memref_slice %arg8[%c0_i32_55, %c0_i32_56] : memref<128x64xf32, #tpu.memory_space<any>> -> memref<1x64xf32, #tpu.memory_space<any>>
      %c3_i32_57 = arith.constant 3 : i32
      %c0_i32_58 = arith.constant 0 : i32
      %89 = tpu.memref_slice %arg13[%c3_i32_57, %c0_i32_58] : memref<8x64xf32, #tpu.memory_space<vmem>> -> memref<1x64xf32, #tpu.memory_space<vmem>>
      %90 = tpu.memref_slice %arg18[%c3_i32] : memref<8x!tpu.dma_semaphore, #tpu.memory_space<semaphore_mem>> -> memref<1x!tpu.dma_semaphore, #tpu.memory_space<semaphore_mem>>
      %91 = tpu.memref_squeeze %90 : memref<1x!tpu.dma_semaphore, #tpu.memory_space<semaphore_mem>> -> memref<!tpu.dma_semaphore, #tpu.memory_space<semaphore_mem>>
      tpu.wait_dma2 semaphore(%91 : memref<!tpu.dma_semaphore, #tpu.memory_space<semaphore_mem>>) src(%88 : memref<1x64xf32, #tpu.memory_space<any>>) dst(%89 : memref<1x64xf32, #tpu.memory_space<vmem>>)
      %c4_i32 = arith.constant 4 : i32
      %c0_i32_59 = arith.constant 0 : i32
      %c0_i32_60 = arith.constant 0 : i32
      %92 = tpu.memref_slice %arg8[%c0_i32_59, %c0_i32_60] : memref<128x64xf32, #tpu.memory_space<any>> -> memref<1x64xf32, #tpu.memory_space<any>>
      %c4_i32_61 = arith.constant 4 : i32
      %c0_i32_62 = arith.constant 0 : i32
      %93 = tpu.memref_slice %arg13[%c4_i32_61, %c0_i32_62] : memref<8x64xf32, #tpu.memory_space<vmem>> -> memref<1x64xf32, #tpu.memory_space<vmem>>
      %94 = tpu.memref_slice %arg18[%c4_i32] : memref<8x!tpu.dma_semaphore, #tpu.memory_space<semaphore_mem>> -> memref<1x!tpu.dma_semaphore, #tpu.memory_space<semaphore_mem>>
      %95 = tpu.memref_squeeze %94 : memref<1x!tpu.dma_semaphore, #tpu.memory_space<semaphore_mem>> -> memref<!tpu.dma_semaphore, #tpu.memory_space<semaphore_mem>>
      tpu.wait_dma2 semaphore(%95 : memref<!tpu.dma_semaphore, #tpu.memory_space<semaphore_mem>>) src(%92 : memref<1x64xf32, #tpu.memory_space<any>>) dst(%93 : memref<1x64xf32, #tpu.memory_space<vmem>>)
      %c5_i32 = arith.constant 5 : i32
      %c0_i32_63 = arith.constant 0 : i32
      %c0_i32_64 = arith.constant 0 : i32
      %96 = tpu.memref_slice %arg8[%c0_i32_63, %c0_i32_64] : memref<128x64xf32, #tpu.memory_space<any>> -> memref<1x64xf32, #tpu.memory_space<any>>
      %c5_i32_65 = arith.constant 5 : i32
      %c0_i32_66 = arith.constant 0 : i32
      %97 = tpu.memref_slice %arg13[%c5_i32_65, %c0_i32_66] : memref<8x64xf32, #tpu.memory_space<vmem>> -> memref<1x64xf32, #tpu.memory_space<vmem>>
      %98 = tpu.memref_slice %arg18[%c5_i32] : memref<8x!tpu.dma_semaphore, #tpu.memory_space<semaphore_mem>> -> memref<1x!tpu.dma_semaphore, #tpu.memory_space<semaphore_mem>>
      %99 = tpu.memref_squeeze %98 : memref<1x!tpu.dma_semaphore, #tpu.memory_space<semaphore_mem>> -> memref<!tpu.dma_semaphore, #tpu.memory_space<semaphore_mem>>
      tpu.wait_dma2 semaphore(%99 : memref<!tpu.dma_semaphore, #tpu.memory_space<semaphore_mem>>) src(%96 : memref<1x64xf32, #tpu.memory_space<any>>) dst(%97 : memref<1x64xf32, #tpu.memory_space<vmem>>)
      %c6_i32_67 = arith.constant 6 : i32
      %c0_i32_68 = arith.constant 0 : i32
      %c0_i32_69 = arith.constant 0 : i32
      %100 = tpu.memref_slice %arg8[%c0_i32_68, %c0_i32_69] : memref<128x64xf32, #tpu.memory_space<any>> -> memref<1x64xf32, #tpu.memory_space<any>>
      %c6_i32_70 = arith.constant 6 : i32
      %c0_i32_71 = arith.constant 0 : i32
      %101 = tpu.memref_slice %arg13[%c6_i32_70, %c0_i32_71] : memref<8x64xf32, #tpu.memory_space<vmem>> -> memref<1x64xf32, #tpu.memory_space<vmem>>
      %102 = tpu.memref_slice %arg18[%c6_i32_67] : memref<8x!tpu.dma_semaphore, #tpu.memory_space<semaphore_mem>> -> memref<1x!tpu.dma_semaphore, #tpu.memory_space<semaphore_mem>>
      %103 = tpu.memref_squeeze %102 : memref<1x!tpu.dma_semaphore, #tpu.memory_space<semaphore_mem>> -> memref<!tpu.dma_semaphore, #tpu.memory_space<semaphore_mem>>
      tpu.wait_dma2 semaphore(%103 : memref<!tpu.dma_semaphore, #tpu.memory_space<semaphore_mem>>) src(%100 : memref<1x64xf32, #tpu.memory_space<any>>) dst(%101 : memref<1x64xf32, #tpu.memory_space<vmem>>)
      %c7_i32 = arith.constant 7 : i32
      %c0_i32_72 = arith.constant 0 : i32
      %c0_i32_73 = arith.constant 0 : i32
      %104 = tpu.memref_slice %arg8[%c0_i32_72, %c0_i32_73] : memref<128x64xf32, #tpu.memory_space<any>> -> memref<1x64xf32, #tpu.memory_space<any>>
      %c7_i32_74 = arith.constant 7 : i32
      %c0_i32_75 = arith.constant 0 : i32
      %105 = tpu.memref_slice %arg13[%c7_i32_74, %c0_i32_75] : memref<8x64xf32, #tpu.memory_space<vmem>> -> memref<1x64xf32, #tpu.memory_space<vmem>>
      %106 = tpu.memref_slice %arg18[%c7_i32] : memref<8x!tpu.dma_semaphore, #tpu.memory_space<semaphore_mem>> -> memref<1x!tpu.dma_semaphore, #tpu.memory_space<semaphore_mem>>
      %107 = tpu.memref_squeeze %106 : memref<1x!tpu.dma_semaphore, #tpu.memory_space<semaphore_mem>> -> memref<!tpu.dma_semaphore, #tpu.memory_space<semaphore_mem>>
      tpu.wait_dma2 semaphore(%107 : memref<!tpu.dma_semaphore, #tpu.memory_space<semaphore_mem>>) src(%104 : memref<1x64xf32, #tpu.memory_space<any>>) dst(%105 : memref<1x64xf32, #tpu.memory_space<vmem>>)
    } else {
    }
    %c0_i32_3 = arith.constant 0 : i32
    %6 = arith.cmpi eq, %arg0, %c0_i32_3 : i32
    %7 = arith.extui %6 : i1 to i32
    %c0_i32_4 = arith.constant 0 : i32
    %8 = arith.cmpi ne, %7, %c0_i32_4 : i32
    scf.if %8 {
      %c0_i32_42 = arith.constant 0 : i32
      %76 = tpu.memref_slice %arg17[%c0_i32_42] : memref<2x!tpu.dma_semaphore, #tpu.memory_space<semaphore_mem>> -> memref<1x!tpu.dma_semaphore, #tpu.memory_space<semaphore_mem>>
      %77 = tpu.memref_squeeze %76 : memref<1x!tpu.dma_semaphore, #tpu.memory_space<semaphore_mem>> -> memref<!tpu.dma_semaphore, #tpu.memory_space<semaphore_mem>>
      tpu.wait_dma2 semaphore(%77 : memref<!tpu.dma_semaphore, #tpu.memory_space<semaphore_mem>>) src(%arg6 : memref<128x256xf32, #tpu.memory_space<any>>) dst(%arg15 : memref<128x256xf32, #tpu.memory_space<vmem>>)
    } else {
    }
    %c0 = arith.constant 0 : index
    %c0_5 = arith.constant 0 : index
    %9 = vector.load %arg13[%c0, %c0_5] : memref<8x64xf32, #tpu.memory_space<vmem>>, vector<8x64xf32>
    %c0_6 = arith.constant 0 : index
    %c0_7 = arith.constant 0 : index
    %10 = vector.load %arg11[%c0_6, %c0_7] : memref<8x64xf32, #tpu.memory_space<vmem>>, vector<8x64xf32>
    %c0_8 = arith.constant 0 : index
    %c0_9 = arith.constant 0 : index
    %11 = vector.load %arg15[%c0_8, %c0_9] : memref<128x256xf32, #tpu.memory_space<vmem>>, vector<64x256xf32>
    %cst = arith.constant dense<0.000000e+00> : vector<8x256xf32>
    %12 = tpu.matmul %9, %11, %cst {dimension_numbers = #tpu.dot_dimension_numbers<[1], [0], [0], [1], [0, 0, 1, 1], [], []>} : vector<8x64xf32>, vector<64x256xf32>, vector<8x256xf32> -> vector<8x256xf32>
    %c64 = arith.constant 64 : index
    %c0_10 = arith.constant 0 : index
    %13 = vector.load %arg15[%c64, %c0_10] : memref<128x256xf32, #tpu.memory_space<vmem>>, vector<64x256xf32>
    %cst_11 = arith.constant dense<0.000000e+00> : vector<8x256xf32>
    %14 = tpu.matmul %10, %13, %cst_11 {dimension_numbers = #tpu.dot_dimension_numbers<[1], [0], [0], [1], [0, 0, 1, 1], [], []>} : vector<8x64xf32>, vector<64x256xf32>, vector<8x256xf32> -> vector<8x256xf32>
    %15 = arith.addf %12, %14 : vector<8x256xf32>
    %c0_12 = arith.constant 0 : index
    %c0_13 = arith.constant 0 : index
    %16 = vector.load %arg1[%c0_12, %c0_13] : memref<8x256xf32, #tpu.memory_space<vmem>>, vector<8x256xf32>
    %17 = arith.addf %15, %16 : vector<8x256xf32>
    %18 = vector.extract_strided_slice %17 {offsets = [0, 0], sizes = [8, 64], strides = [1, 1]} : vector<8x256xf32> to vector<8x64xf32>
    %19 = arith.negf %18 : vector<8x64xf32>
    %20 = math.exp %19 : vector<8x64xf32>
    %cst_14 = arith.constant 1.000000e+00 : f32
    %21 = vector.broadcast %cst_14 : f32 to vector<8x64xf32>
    %22 = arith.addf %21, %20 : vector<8x64xf32>
    %23 = arith.divf %21, %22 : vector<8x64xf32>
    %24 = vector.extract_strided_slice %17 {offsets = [0, 64], sizes = [8, 64], strides = [1, 1]} : vector<8x256xf32> to vector<8x64xf32>
    %25 = arith.negf %24 : vector<8x64xf32>
    %26 = math.exp %25 : vector<8x64xf32>
    %cst_15 = arith.constant 1.000000e+00 : f32
    %27 = vector.broadcast %cst_15 : f32 to vector<8x64xf32>
    %28 = arith.addf %27, %26 : vector<8x64xf32>
    %29 = arith.divf %27, %28 : vector<8x64xf32>
    %30 = vector.extract_strided_slice %17 {offsets = [0, 128], sizes = [8, 64], strides = [1, 1]} : vector<8x256xf32> to vector<8x64xf32>
    %31 = math.tanh %30 : vector<8x64xf32>
    %32 = vector.extract_strided_slice %17 {offsets = [0, 192], sizes = [8, 64], strides = [1, 1]} : vector<8x256xf32> to vector<8x64xf32>
    %33 = arith.negf %32 : vector<8x64xf32>
    %34 = math.exp %33 : vector<8x64xf32>
    %cst_16 = arith.constant 1.000000e+00 : f32
    %35 = vector.broadcast %cst_16 : f32 to vector<8x64xf32>
    %36 = arith.addf %35, %34 : vector<8x64xf32>
    %37 = arith.divf %35, %36 : vector<8x64xf32>
    %c0_17 = arith.constant 0 : index
    %c0_18 = arith.constant 0 : index
    %38 = vector.load %arg12[%c0_17, %c0_18] : memref<8x64xf32, #tpu.memory_space<vmem>>, vector<8x64xf32>
    %39 = arith.mulf %29, %38 : vector<8x64xf32>
    %40 = arith.mulf %23, %31 : vector<8x64xf32>
    %41 = arith.addf %39, %40 : vector<8x64xf32>
    %42 = math.tanh %41 : vector<8x64xf32>
    %43 = arith.mulf %37, %42 : vector<8x64xf32>
    %c0_19 = arith.constant 0 : index
    %c0_20 = arith.constant 0 : index
    %44 = vector.load %arg11[%c0_19, %c0_20] : memref<8x64xf32, #tpu.memory_space<vmem>>, vector<8x64xf32>
    tpu.vector_store %arg11[%c0_19, %c0_20], %43 {strides = array<i32>} : memref<8x64xf32, #tpu.memory_space<vmem>>, vector<8x64xf32>,
    %c0_21 = arith.constant 0 : index
    %c0_22 = arith.constant 0 : index
    %45 = vector.load %arg12[%c0_21, %c0_22] : memref<8x64xf32, #tpu.memory_space<vmem>>, vector<8x64xf32>
    tpu.vector_store %arg12[%c0_21, %c0_22], %41 {strides = array<i32>} : memref<8x64xf32, #tpu.memory_space<vmem>>, vector<8x64xf32>,
    %c0_23 = arith.constant 0 : index
    %c0_24 = arith.constant 0 : index
    %46 = vector.load %arg14[%c0_23, %c0_24] : memref<8x64xf32, #tpu.memory_space<vmem>>, vector<8x64xf32>
    %47 = arith.addf %46, %43 : vector<8x64xf32>
    %c0_25 = arith.constant 0 : index
    %c0_26 = arith.constant 0 : index
    %48 = vector.load %arg14[%c0_25, %c0_26] : memref<8x64xf32, #tpu.memory_space<vmem>>, vector<8x64xf32>
    tpu.vector_store %arg14[%c0_25, %c0_26], %47 {strides = array<i32>} : memref<8x64xf32, #tpu.memory_space<vmem>>, vector<8x64xf32>,
    %c0_i32_27 = arith.constant 0 : i32
    %49 = arith.cmpi eq, %arg0, %c0_i32_27 : i32
    %50 = arith.extui %49 : i1 to i32
    %c0_i32_28 = arith.constant 0 : i32
    %51 = arith.cmpi ne, %50, %c0_i32_28 : i32
    scf.if %51 {
      %c1_i32 = arith.constant 1 : i32
      %76 = tpu.memref_slice %arg17[%c1_i32] : memref<2x!tpu.dma_semaphore, #tpu.memory_space<semaphore_mem>> -> memref<1x!tpu.dma_semaphore, #tpu.memory_space<semaphore_mem>>
      %77 = tpu.memref_squeeze %76 : memref<1x!tpu.dma_semaphore, #tpu.memory_space<semaphore_mem>> -> memref<!tpu.dma_semaphore, #tpu.memory_space<semaphore_mem>>
      tpu.wait_dma2 semaphore(%77 : memref<!tpu.dma_semaphore, #tpu.memory_space<semaphore_mem>>) src(%arg7 : memref<64x128xf32, #tpu.memory_space<any>>) dst(%arg16 : memref<64x128xf32, #tpu.memory_space<vmem>>)
    } else {
    }
    %c0_29 = arith.constant 0 : index
    %c0_30 = arith.constant 0 : index
    %52 = vector.load %arg16[%c0_29, %c0_30] : memref<64x128xf32, #tpu.memory_space<vmem>>, vector<64x128xf32>
    %cst_31 = arith.constant dense<0.000000e+00> : vector<8x128xf32>
    %53 = tpu.matmul %43, %52, %cst_31 {dimension_numbers = #tpu.dot_dimension_numbers<[1], [0], [0], [1], [0, 0, 1, 1], [], []>} : vector<8x64xf32>, vector<64x128xf32>, vector<8x128xf32> -> vector<8x128xf32>
    %c0_32 = arith.constant 0 : index
    %c0_33 = arith.constant 0 : index
    %54 = vector.load %arg5[%c0_32, %c0_33] : memref<1x128xf32, #tpu.memory_space<vmem>>, vector<1x128xf32>
    %55 = vector.broadcast %54 : vector<1x128xf32> to vector<8x128xf32>
    %56 = arith.addf %53, %55 : vector<8x128xf32>
    %cst_34 = arith.constant dense<0xFF800000> : vector<8xf32>
    %57 = vector.multi_reduction <maximumf>, %56, %cst_34 [1] : vector<8x128xf32> to vector<8xf32>
    %58 = vector.shape_cast %57 : vector<8xf32> to vector<8x1xf32>
    %59 = vector.broadcast %58 : vector<8x1xf32> to vector<8x128xf32>
    %60 = arith.subf %56, %59 : vector<8x128xf32>
    %61 = math.exp %60 : vector<8x128xf32>
    %cst_35 = arith.constant dense<0.000000e+00> : vector<8xf32>
    %62 = vector.multi_reduction <add>, %61, %cst_35 [1] : vector<8x128xf32> to vector<8xf32>
    %63 = vector.shape_cast %62 : vector<8xf32> to vector<8x1xf32>
    %64 = math.log %63 : vector<8x1xf32>
    %65 = vector.broadcast %64 : vector<8x1xf32> to vector<8x128xf32>
    %66 = arith.subf %60, %65 : vector<8x128xf32>
    %c0_36 = arith.constant 0 : index
    %c0_37 = arith.constant 0 : index
    %c0_38 = arith.constant 0 : index
    %67 = vector.load %arg9[%c0_36, %c0_37, %c0_38] : memref<1x8x128xf32, #tpu.memory_space<vmem>>, vector<1x8x128xf32>
    %68 = vector.shape_cast %67 : vector<1x8x128xf32> to vector<8x128xf32>
    %69 = vector.shape_cast %66 : vector<8x128xf32> to vector<1x8x128xf32>
    tpu.vector_store %arg9[%c0_36, %c0_37, %c0_38], %69 {strides = array<i32>} : memref<1x8x128xf32, #tpu.memory_space<vmem>>, vector<1x8x128xf32>,
    %c6_i32 = arith.constant 6 : i32
    %70 = arith.cmpi slt, %arg0, %c6_i32 : i32
    %71 = arith.extui %70 : i1 to i32
    %c0_i32_39 = arith.constant 0 : i32
    %72 = arith.cmpi ne, %71, %c0_i32_39 : i32
    scf.if %72 {
      %76 = tpu.iota {dimensions = array<i32: 1>} : vector<8x128xi32>
      %77 = vector.broadcast %58 : vector<8x1xf32> to vector<8x128xf32>
      %78 = arith.cmpf oeq, %56, %77 : vector<8x128xf32>
      %c128_i32 = arith.constant 128 : i32
      %79 = vector.broadcast %c128_i32 : i32 to vector<8x128xi32>
      %80 = arith.select %78, %76, %79 : vector<8x128xi1>, vector<8x128xi32>
      %cst_42 = arith.constant dense<2147483647> : vector<8xi32>
      %81 = vector.multi_reduction <minsi>, %80, %cst_42 [1] : vector<8x128xi32> to vector<8xi32>
      %82 = vector.shape_cast %81 : vector<8xi32> to vector<8x1xi32>
      %83 = tpu.iota {dimensions = array<i32: 0>} : vector<8x1xi32>
      %c0_i32_43 = arith.constant 0 : i32
      %84 = vector.broadcast %c0_i32_43 : i32 to vector<8x1xi32>
      %85 = arith.cmpi eq, %83, %84 : vector<8x1xi32>
      %c0_i32_44 = arith.constant 0 : i32
      %86 = vector.broadcast %c0_i32_44 : i32 to vector<8x1xi32>
      %87 = arith.select %85, %82, %86 : vector<8x1xi1>, vector<8x1xi32>
      %88 = vector.shape_cast %87 : vector<8x1xi32> to vector<1x8x1xi32>
      %cst_45 = arith.constant dense<-2147483648> : vector<1xi32>
      %89 = vector.multi_reduction <maxsi>, %88, %cst_45 [1, 2] : vector<1x8x1xi32> to vector<1xi32>
      %90 = vector.shape_cast %89 : vector<1xi32> to vector<1x1x1xi32>
      %91 = vector.extract %90[0, 0, 0] : i32 from vector<1x1x1xi32>
      %c0_46 = arith.constant 0 : index
      %92 = memref.load %arg19[%c0_46] : memref<8xi32, #tpu.memory_space<smem>>
      memref.store %91, %arg19[%c0_46] : memref<8xi32, #tpu.memory_space<smem>>
      %c1_i32 = arith.constant 1 : i32
      %93 = vector.broadcast %c1_i32 : i32 to vector<8x1xi32>
      %94 = arith.cmpi eq, %83, %93 : vector<8x1xi32>
      %c0_i32_47 = arith.constant 0 : i32
      %95 = vector.broadcast %c0_i32_47 : i32 to vector<8x1xi32>
      %96 = arith.select %94, %82, %95 : vector<8x1xi1>, vector<8x1xi32>
      %97 = vector.shape_cast %96 : vector<8x1xi32> to vector<1x8x1xi32>
      %cst_48 = arith.constant dense<-2147483648> : vector<1xi32>
      %98 = vector.multi_reduction <maxsi>, %97, %cst_48 [1, 2] : vector<1x8x1xi32> to vector<1xi32>
      %99 = vector.shape_cast %98 : vector<1xi32> to vector<1x1x1xi32>
      %100 = vector.extract %99[0, 0, 0] : i32 from vector<1x1x1xi32>
      %c1 = arith.constant 1 : index
      %101 = memref.load %arg19[%c1] : memref<8xi32, #tpu.memory_space<smem>>
      memref.store %100, %arg19[%c1] : memref<8xi32, #tpu.memory_space<smem>>
      %c2_i32 = arith.constant 2 : i32
      %102 = vector.broadcast %c2_i32 : i32 to vector<8x1xi32>
      %103 = arith.cmpi eq, %83, %102 : vector<8x1xi32>
      %c0_i32_49 = arith.constant 0 : i32
      %104 = vector.broadcast %c0_i32_49 : i32 to vector<8x1xi32>
      %105 = arith.select %103, %82, %104 : vector<8x1xi1>, vector<8x1xi32>
      %106 = vector.shape_cast %105 : vector<8x1xi32> to vector<1x8x1xi32>
      %cst_50 = arith.constant dense<-2147483648> : vector<1xi32>
      %107 = vector.multi_reduction <maxsi>, %106, %cst_50 [1, 2] : vector<1x8x1xi32> to vector<1xi32>
      %108 = vector.shape_cast %107 : vector<1xi32> to vector<1x1x1xi32>
      %109 = vector.extract %108[0, 0, 0] : i32 from vector<1x1x1xi32>
      %c2 = arith.constant 2 : index
      %110 = memref.load %arg19[%c2] : memref<8xi32, #tpu.memory_space<smem>>
      memref.store %109, %arg19[%c2] : memref<8xi32, #tpu.memory_space<smem>>
      %c3_i32 = arith.constant 3 : i32
      %111 = vector.broadcast %c3_i32 : i32 to vector<8x1xi32>
      %112 = arith.cmpi eq, %83, %111 : vector<8x1xi32>
      %c0_i32_51 = arith.constant 0 : i32
      %113 = vector.broadcast %c0_i32_51 : i32 to vector<8x1xi32>
      %114 = arith.select %112, %82, %113 : vector<8x1xi1>, vector<8x1xi32>
      %115 = vector.shape_cast %114 : vector<8x1xi32> to vector<1x8x1xi32>
      %cst_52 = arith.constant dense<-2147483648> : vector<1xi32>
      %116 = vector.multi_reduction <maxsi>, %115, %cst_52 [1, 2] : vector<1x8x1xi32> to vector<1xi32>
      %117 = vector.shape_cast %116 : vector<1xi32> to vector<1x1x1xi32>
      %118 = vector.extract %117[0, 0, 0] : i32 from vector<1x1x1xi32>
      %c3 = arith.constant 3 : index
      %119 = memref.load %arg19[%c3] : memref<8xi32, #tpu.memory_space<smem>>
      memref.store %118, %arg19[%c3] : memref<8xi32, #tpu.memory_space<smem>>
      %c4_i32 = arith.constant 4 : i32
      %120 = vector.broadcast %c4_i32 : i32 to vector<8x1xi32>
      %121 = arith.cmpi eq, %83, %120 : vector<8x1xi32>
      %c0_i32_53 = arith.constant 0 : i32
      %122 = vector.broadcast %c0_i32_53 : i32 to vector<8x1xi32>
      %123 = arith.select %121, %82, %122 : vector<8x1xi1>, vector<8x1xi32>
      %124 = vector.shape_cast %123 : vector<8x1xi32> to vector<1x8x1xi32>
      %cst_54 = arith.constant dense<-2147483648> : vector<1xi32>
      %125 = vector.multi_reduction <maxsi>, %124, %cst_54 [1, 2] : vector<1x8x1xi32> to vector<1xi32>
      %126 = vector.shape_cast %125 : vector<1xi32> to vector<1x1x1xi32>
      %127 = vector.extract %126[0, 0, 0] : i32 from vector<1x1x1xi32>
      %c4 = arith.constant 4 : index
      %128 = memref.load %arg19[%c4] : memref<8xi32, #tpu.memory_space<smem>>
      memref.store %127, %arg19[%c4] : memref<8xi32, #tpu.memory_space<smem>>
      %c5_i32 = arith.constant 5 : i32
      %129 = vector.broadcast %c5_i32 : i32 to vector<8x1xi32>
      %130 = arith.cmpi eq, %83, %129 : vector<8x1xi32>
      %c0_i32_55 = arith.constant 0 : i32
      %131 = vector.broadcast %c0_i32_55 : i32 to vector<8x1xi32>
      %132 = arith.select %130, %82, %131 : vector<8x1xi1>, vector<8x1xi32>
      %133 = vector.shape_cast %132 : vector<8x1xi32> to vector<1x8x1xi32>
      %cst_56 = arith.constant dense<-2147483648> : vector<1xi32>
      %134 = vector.multi_reduction <maxsi>, %133, %cst_56 [1, 2] : vector<1x8x1xi32> to vector<1xi32>
      %135 = vector.shape_cast %134 : vector<1xi32> to vector<1x1x1xi32>
      %136 = vector.extract %135[0, 0, 0] : i32 from vector<1x1x1xi32>
      %c5 = arith.constant 5 : index
      %137 = memref.load %arg19[%c5] : memref<8xi32, #tpu.memory_space<smem>>
      memref.store %136, %arg19[%c5] : memref<8xi32, #tpu.memory_space<smem>>
      %c6_i32_57 = arith.constant 6 : i32
      %138 = vector.broadcast %c6_i32_57 : i32 to vector<8x1xi32>
      %139 = arith.cmpi eq, %83, %138 : vector<8x1xi32>
      %c0_i32_58 = arith.constant 0 : i32
      %140 = vector.broadcast %c0_i32_58 : i32 to vector<8x1xi32>
      %141 = arith.select %139, %82, %140 : vector<8x1xi1>, vector<8x1xi32>
      %142 = vector.shape_cast %141 : vector<8x1xi32> to vector<1x8x1xi32>
      %cst_59 = arith.constant dense<-2147483648> : vector<1xi32>
      %143 = vector.multi_reduction <maxsi>, %142, %cst_59 [1, 2] : vector<1x8x1xi32> to vector<1xi32>
      %144 = vector.shape_cast %143 : vector<1xi32> to vector<1x1x1xi32>
      %145 = vector.extract %144[0, 0, 0] : i32 from vector<1x1x1xi32>
      %c6 = arith.constant 6 : index
      %146 = memref.load %arg19[%c6] : memref<8xi32, #tpu.memory_space<smem>>
      memref.store %145, %arg19[%c6] : memref<8xi32, #tpu.memory_space<smem>>
      %c7_i32 = arith.constant 7 : i32
      %147 = vector.broadcast %c7_i32 : i32 to vector<8x1xi32>
      %148 = arith.cmpi eq, %83, %147 : vector<8x1xi32>
      %c0_i32_60 = arith.constant 0 : i32
      %149 = vector.broadcast %c0_i32_60 : i32 to vector<8x1xi32>
      %150 = arith.select %148, %82, %149 : vector<8x1xi1>, vector<8x1xi32>
      %151 = vector.shape_cast %150 : vector<8x1xi32> to vector<1x8x1xi32>
      %cst_61 = arith.constant dense<-2147483648> : vector<1xi32>
      %152 = vector.multi_reduction <maxsi>, %151, %cst_61 [1, 2] : vector<1x8x1xi32> to vector<1xi32>
      %153 = vector.shape_cast %152 : vector<1xi32> to vector<1x1x1xi32>
      %154 = vector.extract %153[0, 0, 0] : i32 from vector<1x1x1xi32>
      %c7 = arith.constant 7 : index
      %155 = memref.load %arg19[%c7] : memref<8xi32, #tpu.memory_space<smem>>
      memref.store %154, %arg19[%c7] : memref<8xi32, #tpu.memory_space<smem>>
      %c0_62 = arith.constant 0 : index
      %156 = memref.load %arg19[%c0_62] : memref<8xi32, #tpu.memory_space<smem>>
      %c0_i32_63 = arith.constant 0 : i32
      %c0_i32_64 = arith.constant 0 : i32
      %157 = tpu.memref_slice %arg8[%156, %c0_i32_64] : memref<128x64xf32, #tpu.memory_space<any>> -> memref<1x64xf32, #tpu.memory_space<any>>
      %c0_i32_65 = arith.constant 0 : i32
      %c0_i32_66 = arith.constant 0 : i32
      %158 = tpu.memref_slice %arg13[%c0_i32_65, %c0_i32_66] : memref<8x64xf32, #tpu.memory_space<vmem>> -> memref<1x64xf32, #tpu.memory_space<vmem>>
      %159 = tpu.memref_slice %arg18[%c0_i32_63] : memref<8x!tpu.dma_semaphore, #tpu.memory_space<semaphore_mem>> -> memref<1x!tpu.dma_semaphore, #tpu.memory_space<semaphore_mem>>
      %160 = tpu.memref_squeeze %159 : memref<1x!tpu.dma_semaphore, #tpu.memory_space<semaphore_mem>> -> memref<!tpu.dma_semaphore, #tpu.memory_space<semaphore_mem>>
      tpu.enqueue_dma source(%157 : memref<1x64xf32, #tpu.memory_space<any>>) target(%158 : memref<1x64xf32, #tpu.memory_space<vmem>>) target_semaphore(%160 : memref<!tpu.dma_semaphore, #tpu.memory_space<semaphore_mem>>)
      %c1_67 = arith.constant 1 : index
      %161 = memref.load %arg19[%c1_67] : memref<8xi32, #tpu.memory_space<smem>>
      %c1_i32_68 = arith.constant 1 : i32
      %c0_i32_69 = arith.constant 0 : i32
      %162 = tpu.memref_slice %arg8[%161, %c0_i32_69] : memref<128x64xf32, #tpu.memory_space<any>> -> memref<1x64xf32, #tpu.memory_space<any>>
      %c1_i32_70 = arith.constant 1 : i32
      %c0_i32_71 = arith.constant 0 : i32
      %163 = tpu.memref_slice %arg13[%c1_i32_70, %c0_i32_71] : memref<8x64xf32, #tpu.memory_space<vmem>> -> memref<1x64xf32, #tpu.memory_space<vmem>>
      %164 = tpu.memref_slice %arg18[%c1_i32_68] : memref<8x!tpu.dma_semaphore, #tpu.memory_space<semaphore_mem>> -> memref<1x!tpu.dma_semaphore, #tpu.memory_space<semaphore_mem>>
      %165 = tpu.memref_squeeze %164 : memref<1x!tpu.dma_semaphore, #tpu.memory_space<semaphore_mem>> -> memref<!tpu.dma_semaphore, #tpu.memory_space<semaphore_mem>>
      tpu.enqueue_dma source(%162 : memref<1x64xf32, #tpu.memory_space<any>>) target(%163 : memref<1x64xf32, #tpu.memory_space<vmem>>) target_semaphore(%165 : memref<!tpu.dma_semaphore, #tpu.memory_space<semaphore_mem>>)
      %c2_72 = arith.constant 2 : index
      %166 = memref.load %arg19[%c2_72] : memref<8xi32, #tpu.memory_space<smem>>
      %c2_i32_73 = arith.constant 2 : i32
      %c0_i32_74 = arith.constant 0 : i32
      %167 = tpu.memref_slice %arg8[%166, %c0_i32_74] : memref<128x64xf32, #tpu.memory_space<any>> -> memref<1x64xf32, #tpu.memory_space<any>>
      %c2_i32_75 = arith.constant 2 : i32
      %c0_i32_76 = arith.constant 0 : i32
      %168 = tpu.memref_slice %arg13[%c2_i32_75, %c0_i32_76] : memref<8x64xf32, #tpu.memory_space<vmem>> -> memref<1x64xf32, #tpu.memory_space<vmem>>
      %169 = tpu.memref_slice %arg18[%c2_i32_73] : memref<8x!tpu.dma_semaphore, #tpu.memory_space<semaphore_mem>> -> memref<1x!tpu.dma_semaphore, #tpu.memory_space<semaphore_mem>>
      %170 = tpu.memref_squeeze %169 : memref<1x!tpu.dma_semaphore, #tpu.memory_space<semaphore_mem>> -> memref<!tpu.dma_semaphore, #tpu.memory_space<semaphore_mem>>
      tpu.enqueue_dma source(%167 : memref<1x64xf32, #tpu.memory_space<any>>) target(%168 : memref<1x64xf32, #tpu.memory_space<vmem>>) target_semaphore(%170 : memref<!tpu.dma_semaphore, #tpu.memory_space<semaphore_mem>>)
      %c3_77 = arith.constant 3 : index
      %171 = memref.load %arg19[%c3_77] : memref<8xi32, #tpu.memory_space<smem>>
      %c3_i32_78 = arith.constant 3 : i32
      %c0_i32_79 = arith.constant 0 : i32
      %172 = tpu.memref_slice %arg8[%171, %c0_i32_79] : memref<128x64xf32, #tpu.memory_space<any>> -> memref<1x64xf32, #tpu.memory_space<any>>
      %c3_i32_80 = arith.constant 3 : i32
      %c0_i32_81 = arith.constant 0 : i32
      %173 = tpu.memref_slice %arg13[%c3_i32_80, %c0_i32_81] : memref<8x64xf32, #tpu.memory_space<vmem>> -> memref<1x64xf32, #tpu.memory_space<vmem>>
      %174 = tpu.memref_slice %arg18[%c3_i32_78] : memref<8x!tpu.dma_semaphore, #tpu.memory_space<semaphore_mem>> -> memref<1x!tpu.dma_semaphore, #tpu.memory_space<semaphore_mem>>
      %175 = tpu.memref_squeeze %174 : memref<1x!tpu.dma_semaphore, #tpu.memory_space<semaphore_mem>> -> memref<!tpu.dma_semaphore, #tpu.memory_space<semaphore_mem>>
      tpu.enqueue_dma source(%172 : memref<1x64xf32, #tpu.memory_space<any>>) target(%173 : memref<1x64xf32, #tpu.memory_space<vmem>>) target_semaphore(%175 : memref<!tpu.dma_semaphore, #tpu.memory_space<semaphore_mem>>)
      %c4_82 = arith.constant 4 : index
      %176 = memref.load %arg19[%c4_82] : memref<8xi32, #tpu.memory_space<smem>>
      %c4_i32_83 = arith.constant 4 : i32
      %c0_i32_84 = arith.constant 0 : i32
      %177 = tpu.memref_slice %arg8[%176, %c0_i32_84] : memref<128x64xf32, #tpu.memory_space<any>> -> memref<1x64xf32, #tpu.memory_space<any>>
      %c4_i32_85 = arith.constant 4 : i32
      %c0_i32_86 = arith.constant 0 : i32
      %178 = tpu.memref_slice %arg13[%c4_i32_85, %c0_i32_86] : memref<8x64xf32, #tpu.memory_space<vmem>> -> memref<1x64xf32, #tpu.memory_space<vmem>>
      %179 = tpu.memref_slice %arg18[%c4_i32_83] : memref<8x!tpu.dma_semaphore, #tpu.memory_space<semaphore_mem>> -> memref<1x!tpu.dma_semaphore, #tpu.memory_space<semaphore_mem>>
      %180 = tpu.memref_squeeze %179 : memref<1x!tpu.dma_semaphore, #tpu.memory_space<semaphore_mem>> -> memref<!tpu.dma_semaphore, #tpu.memory_space<semaphore_mem>>
      tpu.enqueue_dma source(%177 : memref<1x64xf32, #tpu.memory_space<any>>) target(%178 : memref<1x64xf32, #tpu.memory_space<vmem>>) target_semaphore(%180 : memref<!tpu.dma_semaphore, #tpu.memory_space<semaphore_mem>>)
      %c5_87 = arith.constant 5 : index
      %181 = memref.load %arg19[%c5_87] : memref<8xi32, #tpu.memory_space<smem>>
      %c5_i32_88 = arith.constant 5 : i32
      %c0_i32_89 = arith.constant 0 : i32
      %182 = tpu.memref_slice %arg8[%181, %c0_i32_89] : memref<128x64xf32, #tpu.memory_space<any>> -> memref<1x64xf32, #tpu.memory_space<any>>
      %c5_i32_90 = arith.constant 5 : i32
      %c0_i32_91 = arith.constant 0 : i32
      %183 = tpu.memref_slice %arg13[%c5_i32_90, %c0_i32_91] : memref<8x64xf32, #tpu.memory_space<vmem>> -> memref<1x64xf32, #tpu.memory_space<vmem>>
      %184 = tpu.memref_slice %arg18[%c5_i32_88] : memref<8x!tpu.dma_semaphore, #tpu.memory_space<semaphore_mem>> -> memref<1x!tpu.dma_semaphore, #tpu.memory_space<semaphore_mem>>
      %185 = tpu.memref_squeeze %184 : memref<1x!tpu.dma_semaphore, #tpu.memory_space<semaphore_mem>> -> memref<!tpu.dma_semaphore, #tpu.memory_space<semaphore_mem>>
      tpu.enqueue_dma source(%182 : memref<1x64xf32, #tpu.memory_space<any>>) target(%183 : memref<1x64xf32, #tpu.memory_space<vmem>>) target_semaphore(%185 : memref<!tpu.dma_semaphore, #tpu.memory_space<semaphore_mem>>)
      %c6_92 = arith.constant 6 : index
      %186 = memref.load %arg19[%c6_92] : memref<8xi32, #tpu.memory_space<smem>>
      %c6_i32_93 = arith.constant 6 : i32
      %c0_i32_94 = arith.constant 0 : i32
      %187 = tpu.memref_slice %arg8[%186, %c0_i32_94] : memref<128x64xf32, #tpu.memory_space<any>> -> memref<1x64xf32, #tpu.memory_space<any>>
      %c6_i32_95 = arith.constant 6 : i32
      %c0_i32_96 = arith.constant 0 : i32
      %188 = tpu.memref_slice %arg13[%c6_i32_95, %c0_i32_96] : memref<8x64xf32, #tpu.memory_space<vmem>> -> memref<1x64xf32, #tpu.memory_space<vmem>>
      %189 = tpu.memref_slice %arg18[%c6_i32_93] : memref<8x!tpu.dma_semaphore, #tpu.memory_space<semaphore_mem>> -> memref<1x!tpu.dma_semaphore, #tpu.memory_space<semaphore_mem>>
      %190 = tpu.memref_squeeze %189 : memref<1x!tpu.dma_semaphore, #tpu.memory_space<semaphore_mem>> -> memref<!tpu.dma_semaphore, #tpu.memory_space<semaphore_mem>>
      tpu.enqueue_dma source(%187 : memref<1x64xf32, #tpu.memory_space<any>>) target(%188 : memref<1x64xf32, #tpu.memory_space<vmem>>) target_semaphore(%190 : memref<!tpu.dma_semaphore, #tpu.memory_space<semaphore_mem>>)
      %c7_97 = arith.constant 7 : index
      %191 = memref.load %arg19[%c7_97] : memref<8xi32, #tpu.memory_space<smem>>
      %c7_i32_98 = arith.constant 7 : i32
      %c0_i32_99 = arith.constant 0 : i32
      %192 = tpu.memref_slice %arg8[%191, %c0_i32_99] : memref<128x64xf32, #tpu.memory_space<any>> -> memref<1x64xf32, #tpu.memory_space<any>>
      %c7_i32_100 = arith.constant 7 : i32
      %c0_i32_101 = arith.constant 0 : i32
      %193 = tpu.memref_slice %arg13[%c7_i32_100, %c0_i32_101] : memref<8x64xf32, #tpu.memory_space<vmem>> -> memref<1x64xf32, #tpu.memory_space<vmem>>
      %194 = tpu.memref_slice %arg18[%c7_i32_98] : memref<8x!tpu.dma_semaphore, #tpu.memory_space<semaphore_mem>> -> memref<1x!tpu.dma_semaphore, #tpu.memory_space<semaphore_mem>>
      %195 = tpu.memref_squeeze %194 : memref<1x!tpu.dma_semaphore, #tpu.memory_space<semaphore_mem>> -> memref<!tpu.dma_semaphore, #tpu.memory_space<semaphore_mem>>
      tpu.enqueue_dma source(%192 : memref<1x64xf32, #tpu.memory_space<any>>) target(%193 : memref<1x64xf32, #tpu.memory_space<vmem>>) target_semaphore(%195 : memref<!tpu.dma_semaphore, #tpu.memory_space<semaphore_mem>>)
    } else {
    }
    %c6_i32_40 = arith.constant 6 : i32
    %73 = arith.cmpi eq, %arg0, %c6_i32_40 : i32
    %74 = arith.extui %73 : i1 to i32
    %c0_i32_41 = arith.constant 0 : i32
    %75 = arith.cmpi ne, %74, %c0_i32_41 : i32
    scf.if %75 {
      %c0_42 = arith.constant 0 : index
      %c0_43 = arith.constant 0 : index
      %76 = vector.load %arg14[%c0_42, %c0_43] : memref<8x64xf32, #tpu.memory_space<vmem>>, vector<8x64xf32>
      %cst_44 = arith.constant 0.142857149 : f32
      %77 = vector.broadcast %cst_44 : f32 to vector<8x64xf32>
      %78 = arith.mulf %76, %77 : vector<8x64xf32>
      %c0_45 = arith.constant 0 : index
      %c0_46 = arith.constant 0 : index
      %79 = vector.load %arg10[%c0_45, %c0_46] : memref<8x64xf32, #tpu.memory_space<vmem>>, vector<8x64xf32>
      tpu.vector_store %arg10[%c0_45, %c0_46], %78 {strides = array<i32>} : memref<8x64xf32, #tpu.memory_space<vmem>>, vector<8x64xf32>,
    } else {
    }
    return
  }
  func.func @transform_0(%arg0: i32) -> (i32, i32) {
    %c0_i32 = arith.constant 0 : i32
    %c0_i32_0 = arith.constant 0 : i32
    %c0_i32_1 = arith.constant 0 : i32
    return %c0_i32, %c0_i32_0 : i32, i32
  }
  func.func @transform_1(%arg0: i32) -> (i32, i32) {
    %c0_i32 = arith.constant 0 : i32
    %c0_i32_0 = arith.constant 0 : i32
    %c0_i32_1 = arith.constant 0 : i32
    return %c0_i32, %c0_i32_0 : i32, i32
  }
  func.func @transform_2(%arg0: i32) -> (i32, i32) {
    %c0_i32 = arith.constant 0 : i32
    %c0_i32_0 = arith.constant 0 : i32
    %c0_i32_1 = arith.constant 0 : i32
    return %c0_i32, %c0_i32_0 : i32, i32
  }
  func.func @transform_3(%arg0: i32) -> (i32, i32) {
    %c0_i32 = arith.constant 0 : i32
    %c0_i32_0 = arith.constant 0 : i32
    %c0_i32_1 = arith.constant 0 : i32
    return %c0_i32, %c0_i32_0 : i32, i32
  }
  func.func @transform_4(%arg0: i32) -> (i32, i32) {
    %c0_i32 = arith.constant 0 : i32
    %c0_i32_0 = arith.constant 0 : i32
    %c0_i32_1 = arith.constant 0 : i32
    return %c0_i32, %c0_i32_0 : i32, i32
  }
  func.func @transform_8(%arg0: i32) -> (i32, i32, i32) {
    %c0_i32 = arith.constant 0 : i32
    %c0_i32_0 = arith.constant 0 : i32
    %c0_i32_1 = arith.constant 0 : i32
    return %arg0, %c0_i32, %c0_i32_0 : i32, i32, i32
  }
  func.func @transform_9(%arg0: i32) -> (i32, i32) {
    %c0_i32 = arith.constant 0 : i32
    %c0_i32_0 = arith.constant 0 : i32
    %c0_i32_1 = arith.constant 0 : i32
    return %c0_i32, %c0_i32_0 : i32, i32
  }
}

</mosaic_0001>

<bundles_post_ra>
// kernel: tpu_custom_call.1
= control target key start
LH: loop header
LB: loop body
LE: loop exit
PB: predicated region body
PF: predicated region fallthrough
CT: control target
= control target key end

     0   :  { %s2146_s0 = inlined_call_operand.vmem [shape: f32[8,256], index: 0, kind: input, shape index: {}]   ;;  %s2147_s1 = inlined_call_operand.vmem [shape: f32[8,64], index: 1, kind: input, shape index: {}]   ;;  %s2148_s2 = inlined_call_operand.vmem [shape: f32[8,64], index: 2, kind: input, shape index: {}]   ;;  %s2149_s3 = inlined_call_operand.vmem [shape: f32[8,64], index: 3, kind: input, shape index: {}]   ;;  %s2150_s4 = inlined_call_operand.vmem [shape: f32[1,128], index: 4, kind: input, shape index: {}]   ;;  %s2151_s5 = inlined_call_operand.hbm [shape: f32[128,256], index: 5, kind: input, shape index: {}]   ;;  %s2152_s6 = inlined_call_operand.vmem [shape: f32[64,128], index: 6, kind: input, shape index: {}]   ;;  %s2153_s7 = inlined_call_operand.vmem [shape: f32[128,64], index: 7, kind: input, shape index: {}]   ;;  %s2154_s8 = inlined_call_operand.hbm [shape: f32[7,8,128], index: 8, kind: output, shape index: {0}]   ;;  %s2155_s9 = inlined_call_operand.hbm [shape: f32[8,64], index: 9, kind: output, shape index: {1}]  }
   0x1   :  { %2157 = sst [smem:[#allocation41_spill]] %s2146_s0 }
   0x2   :  { %2158 = sst [smem:[#allocation42_spill]] %s2147_s1 }
   0x3   :  { %2159 = sst [smem:[#allocation43_spill]] %s2148_s2 }
   0x4   :  { %2160 = sst [smem:[#allocation44_spill]] %s2149_s3 }
   0x5   :  { %2161 = sst [smem:[#allocation45_spill]] %s2150_s4 }
   0x6   :  { %15 = vsyncpa [#allocation12], 0 }
   0x7   :  { %17 = vsyncpa [#allocation12 + $0x1], 0 }
   0x8   :  { %18 = vsyncpa [#allocation14], 0  ;;  %s1885_s30 = smov 0   ;;  %s1887_s10 = smov 0  }
   0x9   :  { %s1889_s11 = smov 0   ;;  %s1891_s12 = smov 0  }
   0xa LB: > { %s1906_s13 = sadd.s32 4294967295, %s1825_s12   ;;  %s1458_s14 = sadd.s32 4294967294, %s1825_s12   ;;  %s1825_s12 = sphi %s1891_s12, %s2178_s12   ;;  %s1821_s11 = sphi %s1889_s11, %s2177_s11   ;;  %s1817_s10 = sphi %s1887_s10, %s2176_s10   ;;  %s1813_s30 = sphi %s1885_s30, %s2175_s30  }
   0xb   : > { %s1910_s15 = sadd.s32 1, %s1825_s12   ;;  %s136_s16 = sadd.s32 1, %s1821_s11 }
   0xc   : > { %s133_s17 = ssub.s32 %s1825_s12, %s1910_s15  ;;  %p146_p0 = scmp.ne.s32.totalorder %s1821_s11, %s1817_s10 }
   0xd   : > { %p134_p1 = scmp.eq.s32.totalorder %s133_s17, 0  ;;  %p147_p2 = scmp.eq.s32.totalorder %s1906_s13, 6 }
   0xe   : > { %p152_p3 = scmp.ne.s32.totalorder %s1817_s10, %s1813_s30  ;;  %p153_p4 = scmp.eq.s32.totalorder %s1458_s14, 6 }
   0xf   : > { %s1921_s18 = scalar_select %p134_p1, %s1821_s11, %s136_s16  }
  0x10   : > { %p1925_p5 = por %p147_p2, %p146_p0  ;;  %p1929_p6 = por %p153_p4, %p152_p3 }
  0x11   : > { %2162 = sst [smem:[#allocation40_spill]] %s1921_s18  ;;  %p1460_p7 = scmp.ge.s32.totalorder %s1825_s12, 1 }
  0x12   : > { %s2164_s20 = scalar_select %p1929_p6, 1, 0 }
  0x13   : > { %p207_p8 = scmp.lt.s32.totalorder %s1825_s12, 8 }
  0x15   : > { %p208_p9 = pnand %p1460_p7, %p207_p8 }
  0x16   : > { %s2156_s21 = sand.u32 (!%p208_p9), 1, %s1817_s10   ;;  %p1462_p10 = scmp.ne.s32.totalorder (!%p208_p9), %s1906_s13, 0 }
  0x17   : > { %211 = sbr.rel (%p208_p9) target bundleno = 1445 (0x5a5), region = 40  ;;  %s1938_s22 = sshll.u32 (!%p208_p9), %s2156_s21, 3 }
  0x1e   : > { %235 = sbr.rel (%p1462_p10) target bundleno = 57 (0x39), region = 44  ;;  %v280_v0 = vld [vmem:[%s2152_s6] sm:$0xff] (!%p1462_p10)  ;;  %v282_v1 = vld [vmem:[%s2152_s6 + $0x8] sm:$0xff] (!%p1462_p10)  ;;  %v284_v2 = vld [vmem:[%s2152_s6 + $0x10] sm:$0xff] (!%p1462_p10)  ;;  %s1827_s14 = smov (!%p1462_p10), [#allocation6]  }
  0x1f   : > { %s243_s16 = sshll.u32 (!%p1462_p10), %s1827_s14, 4  ;;  %281 = vst [vmem:[#allocation7] sm:$0xff] (!%p1462_p10), %v280_v0  ;;  %283 = vst [vmem:[#allocation7 + $0x8] sm:$0xff] (!%p1462_p10), %v282_v1  ;;  %v286_v3 = vld [vmem:[%s2152_s6 + $0x18] sm:$0xff] (!%p1462_p10)  ;;  %v288_v4 = vld [vmem:[%s2152_s6 + $0x20] sm:$0xff] (!%p1462_p10)  ;;  %s1671_s23 = scalar_lea.hbm (!%p1462_p10), %s2151_s5, 4096  ;;  %s244_s16 = int_to_ptr.vmem [resolvable:$true] %s243_s16 }
  0x20   : > { %285 = vst [vmem:[#allocation7 + $0x10] sm:$0xff] (!%p1462_p10), %v284_v2  ;;  %v290_v5 = vld [vmem:[%s2152_s6 + $0x28] sm:$0xff] (!%p1462_p10)  ;;  %287 = vst [vmem:[#allocation7 + $0x18] sm:$0xff] (!%p1462_p10), %v286_v3  ;;  %v292_v6 = vld [vmem:[%s2152_s6 + $0x30] sm:$0xff] (!%p1462_p10)  ;;  %p1672_p11 = scmp.ne.s32.totalorder (!%p1462_p10), %s2151_s5, %s1671_s23  ;;  %p1675_p12 = scmp.lt.u32.totalorder (!%p1462_p10), %s1671_s23, %s2151_s5 }
  0x21   : > { %289 = vst [vmem:[#allocation7 + $0x20] sm:$0xff] (!%p1462_p10), %v288_v4  ;;  %291 = vst [vmem:[#allocation7 + $0x28] sm:$0xff] (!%p1462_p10), %v290_v5  ;;  %v294_v7 = vld [vmem:[%s2152_s6 + $0x38] sm:$0xff] (!%p1462_p10) }
  0x22   : > { %p1677_p13 = pnand (!%p1462_p10), %p1675_p12, %p1672_p11 }
  0x25   : > { %1680 = shalt.err (!%p1677_p13)  }
  0x26   : > { %s1681_s27 = scalar_lea.vmem %s244_s16, 4096  ;;  %p1686_p1 = scmp.lt.s32.totalorder %s244_s16, %s244_s16 }
  0x27   : > { %p1682_p0 = scmp.ne.s32.totalorder %s244_s16, %s1681_s27  ;;  %p1687_p3 = scmp.lt.s32.totalorder %s1681_s27, %s1681_s27 }
  0x29   : > { %p1688_p4 = por %p1687_p3, %p1686_p1 }
  0x2b   : > { %p1689_p7 = pnand %p1688_p4, %p1682_p0 }
  0x2d   : > { %1692 = shalt.err (!%p1689_p7)  }
  0x2e   : > { %246 = dma.hbm_to_vmem [thread:$0]  %s2151_s5, 4096, %s244_s16, [#allocation8]  ;;  %293 = vst [vmem:[#allocation7 + $0x30] sm:$0xff] %v292_v6  ;;  %295 = vst [vmem:[#allocation7 + $0x38] sm:$0xff] %v294_v7 }
  0x2f   : > { %303 = vsyncadd [#allocation8 + $0x1], 1024  ;;  %s2165_s1 = sld [smem:[#allocation42_spill]]  ;;  %vm305_vm0 = vcmask 523264   ;;  %s2166_s2 = sld [smem:[#allocation43_spill]]  ;;  %v1828_v11 = vmov 0.0  }
  0x30   : > { %s2167_s3 = sld [smem:[#allocation44_spill]]  ;;  %311 = vst.msk [vmem:[#allocation5] sm:$0xff] %vm305_vm0, %v1828_v11 }
  0x35   : > { %v304_v8 = vld [vmem:[%s2165_s1] sm:$0xff] }
  0x36   : > { %v307_v9 = vld [vmem:[%s2166_s2] sm:$0xff]  ;;  %306 = vst.msk [vmem:[#allocation2] sm:$0xff] %vm305_vm0, %v304_v8 }
  0x37   : > { %308 = vst.msk [vmem:[#allocation3] sm:$0xff] %vm305_vm0, %v307_v9  ;;  %v309_v10 = vld [vmem:[%s2167_s3] sm:$0xff] }
  0x38   : > { %310 = vst.msk [vmem:[#allocation4] sm:$0xff] %vm305_vm0, %v309_v10 }
  0x39 PF: > { %p1610_p8 = scmp.gt.s32.totalorder %s1906_s13, 0 }
  0x3b   : > { %1764 = dma.done.wait (%p1610_p8), [#allocation9], 16 }
  0x3c   : > { %1766 = vsyncadd (%p1610_p8), [#allocation9], 4294967280 }
  0x3d   : > { %1768 = dma.done.wait (%p1610_p8), [#allocation9 + $0x1], 16 }
  0x3e   : > { %1770 = vsyncadd (%p1610_p8), [#allocation9 + $0x1], 4294967280 }
  0x3f   : > { %1772 = dma.done.wait (%p1610_p8), [#allocation9 + $0x2], 16 }
  0x40   : > { %1774 = vsyncadd (%p1610_p8), [#allocation9 + $0x2], 4294967280 }
  0x41   : > { %1776 = dma.done.wait (%p1610_p8), [#allocation9 + $0x3], 16 }
  0x42   : > { %1778 = vsyncadd (%p1610_p8), [#allocation9 + $0x3], 4294967280 }
  0x43   : > { %1780 = dma.done.wait (%p1610_p8), [#allocation9 + $0x4], 16 }
  0x44   : > { %1782 = vsyncadd (%p1610_p8), [#allocation9 + $0x4], 4294967280 }
  0x45   : > { %1784 = dma.done.wait (%p1610_p8), [#allocation9 + $0x5], 16 }
  0x46   : > { %1786 = vsyncadd (%p1610_p8), [#allocation9 + $0x5], 4294967280 }
  0x47   : > { %1788 = dma.done.wait (%p1610_p8), [#allocation9 + $0x6], 16 }
  0x48   : > { %1790 = vsyncadd (%p1610_p8), [#allocation9 + $0x6], 4294967280 }
  0x49   : > { %1792 = dma.done.wait (%p1610_p8), [#allocation9 + $0x7], 16 }
  0x4a   : > { %1794 = vsyncadd (%p1610_p8), [#allocation9 + $0x7], 4294967280  ;;  %p1611_p9 = scmp.eq.s32.totalorder %s1906_s13, 0 }
  0x4c   : > { %1796 = dma.done.wait (%p1611_p9), [#allocation8], 4096 }
  0x4d   : > { %1798 = vsyncadd (%p1611_p9), [#allocation8], 4294963200  ;;  %v1829_v12 = vmov 0.0   ;;  %v366_v13 = vld [vmem:[#allocation6 + $0x88] sm:$0xff]  ;;  %v368_v14 = vld [vmem:[#allocation6 + $0x98] sm:$0xff]  ;;  %s1830_s16 = smov 64  }
  0x4e   : > { %449 = vmatprep.mubr.f32.mxu0 %v1829_v12  ;;  %v365_v15 = vld [vmem:[#allocation6 + $0x80] sm:$0xff]  ;;  %v1525_v16 = vpack.c.bf16 %v368_v14, %v366_v13  ;;  %v367_v17 = vld [vmem:[#allocation6 + $0x90] sm:$0xff]  ;;  %v370_v18 = vld [vmem:[#allocation6 + $0xa8] sm:$0xff]  ;;  %vm381_vm1 = vcmask 523264   ;;  %s2168_s0 = sld [smem:[#allocation41_spill]] }
  0x4f   : > { %v372_v19 = vld [vmem:[#allocation6 + $0xb8] sm:$0xff]  ;;  %v1527_v20 = vpack.c.bf16 %v367_v17, %v365_v15  ;;  %v369_v22 = vld [vmem:[#allocation6 + $0xa0] sm:$0xff]  ;;  %v371_v23 = vld [vmem:[#allocation6 + $0xb0] sm:$0xff] }
  0x50   : > { %v1529_v21 = vpack.c.bf16 %v372_v19, %v370_v18  ;;  %v374_v24 = vld [vmem:[#allocation6 + $0xc8] sm:$0xff]  ;;  %1526 = vmatprep.subr.bf16.mxu0 %v1525_v16  ;;  %v376_v25 = vld [vmem:[#allocation6 + $0xd8] sm:$0xff]  ;;  %v1531_v26 = vpack.c.bf16 %v371_v23, %v369_v22  ;;  %v373_v28 = vld [vmem:[#allocation6 + $0xc0] sm:$0xff] }
  0x51   : > { %1528 = vmatpush1.bf16.msra.mxu0 %v1527_v20  ;;  %v1533_v27 = vpack.c.bf16 %v376_v25, %v374_v24  ;;  %v375_v29 = vld [vmem:[#allocation6 + $0xd0] sm:$0xff]  ;;  %v378_v30 = vld [vmem:[#allocation6 + $0xe8] sm:$0xff]  ;;  %v380_v31 = vld [vmem:[#allocation6 + $0xf8] sm:$0xff] }
  0x52   : > { %1530 = vmatprep.subr.bf16.mxu0 %v1529_v21  ;;  %v1535_v32 = vpack.c.bf16 %v375_v29, %v373_v28  ;;  %v1537_v33 = vpack.c.bf16 %v380_v31, %v378_v30  ;;  %v377_v34 = vld [vmem:[#allocation6 + $0xe0] sm:$0xff]  ;;  %v379_v35 = vld [vmem:[#allocation6 + $0xf0] sm:$0xff]  ;;  %v350_v36 = vld [vmem:[#allocation6 + $0x8] sm:$0xff] }
  0x53   : > { %v352_v37 = vld [vmem:[#allocation6 + $0x18] sm:$0xff]  ;;  %v547_v38 = vld [vmem:[#allocation3] sm:$0xff]  ;;  %v1539_v39 = vpack.c.bf16 %v379_v35, %v377_v34  ;;  %v349_v41 = vld [vmem:[#allocation6] sm:$0xff] }
  0x54   : > { %549 = vrot.lane.b32.xlu0 %v547_v38, %s1830_s16  ;;  %v1541_v40 = vpack.c.bf16 %v352_v37, %v350_v36  ;;  %v351_v42 = vld [vmem:[#allocation6 + $0x10] sm:$0xff]  ;;  %v354_v43 = vld [vmem:[#allocation6 + $0x28] sm:$0xff]  ;;  %v356_v44 = vld [vmem:[#allocation6 + $0x38] sm:$0xff] }
  0x55   : > { %1532 = vmatpush1.bf16.msra.mxu0 %v1531_v26  ;;  %v348_v45 = vld [vmem:[#allocation2] sm:$0xff]  ;;  %v1543_v46 = vpack.c.bf16 %v351_v42, %v349_v41  ;;  %v1545_v47 = vpack.c.bf16 %v356_v44, %v354_v43  ;;  %v355_v49 = vld [vmem:[#allocation6 + $0x30] sm:$0xff]  ;;  %v358_v50 = vld [vmem:[#allocation6 + $0x48] sm:$0xff] }
  0x56   : > { %1534 = vmatprep.subr.bf16.mxu0 %v1533_v27  ;;  %v353_v48 = vld [vmem:[#allocation6 + $0x20] sm:$0xff]  ;;  %v360_v51 = vld [vmem:[#allocation6 + $0x58] sm:$0xff]  ;;  %v359_v55 = vld [vmem:[#allocation6 + $0x50] sm:$0xff] }
  0x57   : > { %v1547_v52 = vpack.c.bf16 %v355_v49, %v353_v48  ;;  %v1549_v53 = vpack.c.bf16 %v360_v51, %v358_v50  ;;  %v357_v54 = vld [vmem:[#allocation6 + $0x40] sm:$0xff]  ;;  %v362_v56 = vld [vmem:[#allocation6 + $0x68] sm:$0xff]  ;;  %v364_v57 = vld [vmem:[#allocation6 + $0x78] sm:$0xff] }
  0x58   : > { %v1551_v58 = vpack.c.bf16 %v359_v55, %v357_v54  ;;  %v1553_v59 = vpack.c.bf16 %v364_v57, %v362_v56  ;;  %v361_v60 = vld [vmem:[#allocation6 + $0x60] sm:$0xff]  ;;  %v363_v61 = vld [vmem:[#allocation6 + $0x70] sm:$0xff]  ;;  %v531_v5 = vld [vmem:[%s2168_s0 + $0x8] sm:$0xff] }
  0x59   : > { %1536 = vmatpush1.bf16.msra.mxu0 %v1535_v32  ;;  %v1555_v62 = vpack.c.bf16 %v363_v61, %v361_v60  ;;  %v347_v63 = vld [vmem:[#allocation4] sm:$0xff]  ;;  %v530_v0 = vld [vmem:[%s2168_s0] sm:$0xff]  ;;  %v571_v23 = vld [vmem:[#allocation5] sm:$0xff] }
  0x5a   : > { %1538 = vmatprep.subr.bf16.mxu0 %v1537_v33 }
  0x5d   : > { %1540 = vmatpush1.bf16.msra.mxu0 %v1539_v39 }
  0x5e   : > { %1542 = vmatprep.subr.bf16.mxu0 %v1541_v40 }
  0x60   : > { %1465 = vmatmul.mubr.msk.f32.vlgmr.msra.gmra.mrb[0].mxu0 %vm381_vm1, %v348_v45 }
  0x61   : > { %1544 = vmatpush1.bf16.msra.mxu0 %v1543_v46  ;;  %523 = vmatprep.mubr.f32.mxu0 %v1829_v12 }
  0x62   : > { %1546 = vmatprep.subr.bf16.mxu0 %v1545_v47 }
  0x65   : > { %1548 = vmatpush1.bf16.msra.mxu0 %v1547_v52 }
  0x66   : > { %1550 = vmatprep.subr.bf16.mxu0 %v1549_v53 }
  0x69   : > { %1552 = vmatpush1.bf16.msra.mxu0 %v1551_v58 }
  0x6a   : > { %1554 = vmatprep.subr.bf16.mxu0 %v1553_v59 }
  0x6d   : > { %1556 = vmatpush1.bf16.msra.mxu0 %v1555_v62 }
  0x70   : > { %1466 = vmatmul.mubr.msk.f32.vlgmr.msra.gmra.mrb[0].mxu0 %vm381_vm1, %v347_v63 }
  0xc6   : > { %v550_v15 = vpop.permute.xlu0 %549 }
 0x143   : > { %v525_v1 = vpop.f32.mrb[0].mxu0 }
 0x144   : > { %v532_v2 = vadd.f32 %v530_v0, %v525_v1  ;;  %v527_v3 = vpop.f32.mrb[1].mxu0 }
 0x145   : > { %v533_v6 = vadd.f32 %v531_v5, %v527_v3 }
 0x146   : > { %v1467_v4 = vmul.f32 -1.442695, %v532_v2 }
 0x147   : > { %v1468_v13 = vmul.f32 -1.442695, %v533_v6 }
 0x148   : > { %1655 = vpow2.f32 %v1467_v4 }
 0x149   : > { %1657 = vtanh.f32 %v533_v6 }
 0x152   : > { %v1656_v7 = vpop.eup %1655 }
 0x153   : > { %v537_v8 = vadd.f32 1.0, %v1656_v7  ;;  %v1658_v9 = vpop.eup %1657 }
 0x155   : > { %1659 = vrcp.f32 %v537_v8 }
 0x156   : > { %1661 = vpow2.f32 %v1468_v13 }
 0x15f   : > { %v1660_v10 = vpop.eup %1659 }
 0x160   : > { %v553_v11 = vmul.f32 %v1660_v10, %v1658_v9  ;;  %v1662_v14 = vpop.eup %1661  ;;  %v552_v17 = vmul.f32 %v1660_v10, %v550_v15 }
 0x161   : > { %v544_v16 = vadd.f32 1.0, %v1662_v14 }
 0x162   : > { %555 = vrot.lane.b32.xlu0 %v553_v11, %s1830_s16 }
 0x163   : > { %1663 = vrcp.f32 %v544_v16 }
 0x16d   : > { %v1664_v20 = vpop.eup %1663 }
 0x1d4   : > { %v556_v18 = vpop.permute.xlu0 %555 }
 0x1d5   : > { %v558_v19 = vadd.f32 %v556_v18, %v552_v17 }
 0x1d7   : > { %1665 = vtanh.f32 %v558_v19 }
 0x1e1   : > { %v1666_v21 = vpop.eup %1665 }
 0x1e2   : > { %v560_v22 = vmul.f32 %v1666_v21, %v1664_v20 }
 0x1e4   : > { %562 = vrot.lane.b32.xlu1 %v560_v22, %s1830_s16 }
 0x1e8   : > { %567 = vrot.lane.b32.xlu1 %v558_v19, %s1830_s16 }
 0x256   : > { %v563_v24 = vpop.permute.xlu1 %562 }
 0x257   : > { %565 = vst.msk [vmem:[#allocation2] sm:$0xff] %vm381_vm1, %v563_v24  ;;  %v572_v25 = vadd.f32 %v571_v23, %v563_v24 }
 0x259   : > { %573 = vst.msk [vmem:[#allocation5] sm:$0xff] %vm381_vm1, %v572_v25 }
 0x25a   : > { %v568_v26 = vpop.permute.xlu1 %567 }
 0x25b   : > { %570 = vst.msk [vmem:[#allocation3] sm:$0xff] %vm381_vm1, %v568_v26 }
 0x25c   : > { %1800 = dma.done.wait (%p1611_p9), [#allocation8 + $0x1], 1024 }
 0x25d   : > { %1802 = vsyncadd (%p1611_p9), [#allocation8 + $0x1], 4294966272  ;;  %v1831_v27 = vmov 0.0|0.0   ;;  %vm1832_vm2 = vmmov 0   ;;  %v581_v28 = vld [vmem:[#allocation7] sm:$0xff]  ;;  %v582_v29 = vld [vmem:[#allocation7 + $0x8] sm:$0xff] }
 0x25e   : > { %1557 = vmatprep.subr.bf16.mxu1 %v1831_v27  ;;  %1522 = vmatprep.mubr.msk.f32.mxu1 %vm1832_vm2, %v1829_v12  ;;  %v583_v30 = vld [vmem:[#allocation7 + $0x10] sm:$0xff]  ;;  %v1558_v31 = vpack.c.bf16 %v582_v29, %v581_v28  ;;  %v584_v32 = vld [vmem:[#allocation7 + $0x18] sm:$0xff]  ;;  %v585_v34 = vld [vmem:[#allocation7 + $0x20] sm:$0xff]  ;;  %s2169_s4 = sld [smem:[#allocation45_spill]]  ;;  %s2170_s14 = scalar_lea.vmem [#allocation11], %s1938_s22 }
 0x25f   : > { %v1561_v33 = vpack.c.bf16 %v584_v32, %v583_v30  ;;  %v586_v35 = vld [vmem:[#allocation7 + $0x28] sm:$0xff]  ;;  %v587_v37 = vld [vmem:[#allocation7 + $0x30] sm:$0xff]  ;;  %v588_v38 = vld [vmem:[#allocation7 + $0x38] sm:$0xff]  ;;  %p1472_p10 = scmp.ge.s32.totalorder %s1906_s13, 6 }
 0x260   : > { %1559 = vmatpush3.bf16.msra.mxu1 %v1558_v31  ;;  %v1564_v36 = vpack.c.bf16 %v586_v35, %v585_v34  ;;  %v1567_v39 = vpack.c.bf16 %v588_v38, %v587_v37  ;;  %v683_v51 = vlaneseq (!%p1472_p10) }
 0x261   : > { %1560 = vmatprep.subr.bf16.mxu1 %v1831_v27 }
 0x262   : > { %v684_v52 = vand.u32 (!%p1472_p10), 127, %v683_v51  ;;  %v702_v61 = vshrl.u32 (!%p1472_p10), %v683_v51, 7 }
 0x264   : > { %1562 = vmatpush3.bf16.msra.mxu1 %v1561_v33  ;;  %v1470_v12 = vld [vmem:[%s2169_s4] ss:$0 sm:$0xff]  ;;  %vm703_vm5 = vcmp.eq.s32.totalorder (!%p1472_p10), %v702_v61, 0  ;;  %vm717_vm6 = vcmp.eq.s32.totalorder (!%p1472_p10), %v702_v61, 1  ;;  %vm731_vm7 = vcmp.eq.s32.totalorder (!%p1472_p10), %v702_v61, 2  ;;  %vm745_vm8 = vcmp.eq.s32.totalorder (!%p1472_p10), %v702_v61, 3 }
 0x265   : > { %1563 = vmatprep.subr.bf16.mxu1 %v1831_v27  ;;  %vm759_vm9 = vcmp.eq.s32.totalorder (!%p1472_p10), %v702_v61, 4  ;;  %vm773_vm10 = vcmp.eq.s32.totalorder (!%p1472_p10), %v702_v61, 5  ;;  %vm787_vm11 = vcmp.eq.s32.totalorder (!%p1472_p10), %v702_v61, 6  ;;  %vm801_vm12 = vcmp.eq.s32.totalorder (!%p1472_p10), %v702_v61, 7 }
 0x268   : > { %1565 = vmatpush3.bf16.msra.mxu1 %v1564_v36 }
 0x269   : > { %1566 = vmatprep.subr.bf16.mxu1 %v1831_v27 }
 0x26c   : > { %1568 = vmatpush3.bf16.msra.mxu1 %v1567_v39 }
 0x26f   : > { %1523 = vmatmul.mubr.msk.f32.vlgmr.msra.gmra.mrb[0].mxu1 %vm381_vm1, %v563_v24 }
 0x342   : > { %v664_v40 = vpop.f32.mrb[0].mxu1 }
 0x343   : > { %v665_v41 = vadd.f32 %v1470_v12, %v664_v40  ;;  %v1524_v42 = vpop.f32.mrb[1].mxu1 }
 0x345   : > { %668 = vmax.xlane.f32.xlu0 %v665_v41 }
 0x3d2   : > { %v669_v43 = vpop.xlane.xlu0 %668 }
 0x3d3   : > { %v670_v44 = vsub.f32 %v665_v41, %v669_v43  ;;  %vm685_vm3 = vcmp.eq.f32.partialorder (!%p1472_p10), %v665_v41, %v669_v43 }
 0x3d4   : > { %v686_v53 = vsel (!%p1472_p10), %vm685_vm3, %v684_v52, 128 }
 0x3d5   : > { %v671_v45 = vmul.f32 1.442695, %v670_v44  ;;  %v688_v54 = vshra.s32 (!%p1472_p10), %v686_v53, 16  ;;  %v687_v56 = vand.u32 (!%p1472_p10), 65535, %v686_v53 }
 0x3d7   : > { %1667 = vpow2.f32 %v671_v45  ;;  %v690_v55 = vcvt.s32.f32 (!%p1472_p10), %v688_v54  ;;  %v689_v57 = vcvt.s32.f32 (!%p1472_p10), %v687_v56 }
 0x3e1   : > { %v1668_v46 = vpop.eup %1667 }
 0x3e2   : > { %673 = vadd.xlane.f32.xlu0 %v1668_v46 }
 0x3e6   : > { %691 = vmin.xlane.f32.xlu0 (!%p1472_p10), %v690_v55 }
 0x46f   : > { %v674_v47 = vpop.xlane.xlu0 %673 }
 0x470   : > { %1669 = vlog2.f32 %v674_v47 }
 0x473   : > { %v692_v58 = vpop.xlane.xlu0 (!%p1472_p10), %691 }
 0x474   : > { %vm693_vm4 = vcmp.eq.f32.partialorder (!%p1472_p10), %v690_v55, %v692_v58  ;;  %v698_v60 = vcvt.f32.s32 (!%p1472_p10), %v692_v58 }
 0x475   : > { %v694_v59 = vsel (!%p1472_p10), %vm693_vm4, %v689_v57, inf }
 0x476   : > { %695 = vmin.xlane.f32.xlu0 (!%p1472_p10), %v694_v59  ;;  %v699_v63 = vshll.u32 (!%p1472_p10), %v698_v60, 16 }
 0x479   : > { %682 = sbr.rel (%p1472_p10) target bundleno = 1385 (0x569), region = 98 }
 0x47a   : > { %v1670_v48 = vpop.eup %1669 }
 0x47b   : > { %v676_v49 = vmul.f32 0.6931472, %v1670_v48 }
 0x47d   : > { %v677_v50 = vsub.f32 %v670_v44, %v676_v49 }
 0x47f   : > { %678 = vst [vmem:[%s2170_s14] sm:$0xff] %v677_v50 }
 0x503   : > { %v696_v62 = vpop.xlane.xlu0 %695 }
 0x504   : > { %v697_v0 = vcvt.f32.s32 %v696_v62 }
 0x506   : > { %v700_v1 = vadd.s32 %v699_v63, %v697_v0 }
 0x508   : > { %v704_v2 = vsel %vm703_vm5, %v700_v1, 0  ;;  %v718_v3 = vsel %vm717_vm6, %v700_v1, 0  ;;  %v732_v4 = vsel %vm731_vm7, %v700_v1, 0  ;;  %v746_v5 = vsel %vm745_vm8, %v700_v1, 0 }
 0x509   : > { %v705_v6 = vrot.slane %v704_v2, 4  ;;  %v719_v7 = vrot.slane %v718_v3, 4  ;;  %v733_v8 = vrot.slane %v732_v4, 4  ;;  %v747_v9 = vrot.slane %v746_v5, 4 }
 0x50a   : > { %v760_v10 = vsel %vm759_vm9, %v700_v1, 0  ;;  %v774_v11 = vsel %vm773_vm10, %v700_v1, 0  ;;  %v788_v13 = vsel %vm787_vm11, %v700_v1, 0  ;;  %v802_v14 = vsel %vm801_vm12, %v700_v1, 0 }
 0x50b   : > { %vm706_vm13 = vcmp.gt.s32.totalorder %v704_v2, %v705_v6  ;;  %vm720_vm14 = vcmp.gt.s32.totalorder %v718_v3, %v719_v7  ;;  %vm734_vm15 = vcmp.gt.s32.totalorder %v732_v4, %v733_v8  ;;  %vm748_vm0 = vcmp.gt.s32.totalorder %v746_v5, %v747_v9 }
 0x50c   : > { %v707_v15 = vsel %vm706_vm13, %v704_v2, %v705_v6  ;;  %v721_v16 = vsel %vm720_vm14, %v718_v3, %v719_v7  ;;  %v735_v17 = vsel %vm734_vm15, %v732_v4, %v733_v8  ;;  %v749_v18 = vsel %vm748_vm0, %v746_v5, %v747_v9 }
 0x50d   : > { %v708_v19 = vrot.slane %v707_v15, 2  ;;  %v722_v20 = vrot.slane %v721_v16, 2  ;;  %v736_v21 = vrot.slane %v735_v17, 2  ;;  %v750_v22 = vrot.slane %v749_v18, 2 }
 0x50e   : > { %v761_v23 = vrot.slane %v760_v10, 4  ;;  %v775_v24 = vrot.slane %v774_v11, 4  ;;  %v789_v25 = vrot.slane %v788_v13, 4  ;;  %v803_v26 = vrot.slane %v802_v14, 4 }
 0x50f   : > { %vm709_vm2 = vcmp.gt.s32.totalorder %v707_v15, %v708_v19  ;;  %vm723_vm3 = vcmp.gt.s32.totalorder %v721_v16, %v722_v20  ;;  %vm737_vm4 = vcmp.gt.s32.totalorder %v735_v17, %v736_v21  ;;  %vm751_vm5 = vcmp.gt.s32.totalorder %v749_v18, %v750_v22 }
 0x510   : > { %v710_v27 = vsel %vm709_vm2, %v707_v15, %v708_v19  ;;  %v724_v28 = vsel %vm723_vm3, %v721_v16, %v722_v20  ;;  %v738_v29 = vsel %vm737_vm4, %v735_v17, %v736_v21  ;;  %v752_v30 = vsel %vm751_vm5, %v749_v18, %v750_v22 }
 0x511   : > { %v711_v31 = vrot.slane %v710_v27, 1  ;;  %v725_v32 = vrot.slane %v724_v28, 1  ;;  %v739_v33 = vrot.slane %v738_v29, 1  ;;  %v753_v34 = vrot.slane %v752_v30, 1 }
 0x512   : > { %vm762_vm6 = vcmp.gt.s32.totalorder %v760_v10, %v761_v23  ;;  %vm776_vm7 = vcmp.gt.s32.totalorder %v774_v11, %v775_v24  ;;  %vm790_vm8 = vcmp.gt.s32.totalorder %v788_v13, %v789_v25  ;;  %vm804_vm9 = vcmp.gt.s32.totalorder %v802_v14, %v803_v26 }
 0x513   : > { %vm712_vm10 = vcmp.gt.s32.totalorder %v710_v27, %v711_v31  ;;  %vm726_vm11 = vcmp.gt.s32.totalorder %v724_v28, %v725_v32  ;;  %vm740_vm12 = vcmp.gt.s32.totalorder %v738_v29, %v739_v33  ;;  %vm754_vm13 = vcmp.gt.s32.totalorder %v752_v30, %v753_v34 }
 0x514   : > { %v713_v35 = vsel %vm712_vm10, %v710_v27, %v711_v31  ;;  %v727_v36 = vsel %vm726_vm11, %v724_v28, %v725_v32  ;;  %v741_v37 = vsel %vm740_vm12, %v738_v29, %v739_v33  ;;  %v755_v38 = vsel %vm754_vm13, %v752_v30, %v753_v34 }
 0x515   : > { %1571 = vpush %v713_v35  ;;  %v763_v39 = vsel %vm762_vm6, %v760_v10, %v761_v23  ;;  %v777_v12 = vsel %vm776_vm7, %v774_v11, %v775_v24  ;;  %v791_v40 = vsel %vm790_vm8, %v788_v13, %v789_v25  ;;  %v805_v41 = vsel %vm804_vm9, %v802_v14, %v803_v26 }
 0x516   : > { %1573 = vpush %v727_v36  ;;  %v764_v42 = vrot.slane %v763_v39, 2  ;;  %v778_v43 = vrot.slane %v777_v12, 2  ;;  %v792_v44 = vrot.slane %v791_v40, 2  ;;  %v806_v45 = vrot.slane %v805_v41, 2 }
 0x517   : > { %1575 = vpush %v741_v37 }
 0x518   : > { %1577 = vpush %v755_v38  ;;  %vm765_vm14 = vcmp.gt.s32.totalorder %v763_v39, %v764_v42  ;;  %vm779_vm15 = vcmp.gt.s32.totalorder %v777_v12, %v778_v43  ;;  %vm793_vm0 = vcmp.gt.s32.totalorder %v791_v40, %v792_v44  ;;  %vm807_vm2 = vcmp.gt.s32.totalorder %v805_v41, %v806_v45 }
 0x519   : > { %v766_v46 = vsel %vm765_vm14, %v763_v39, %v764_v42  ;;  %v780_v47 = vsel %vm779_vm15, %v777_v12, %v778_v43  ;;  %v794_v48 = vsel %vm793_vm0, %v791_v40, %v792_v44  ;;  %v808_v49 = vsel %vm807_vm2, %v805_v41, %v806_v45 }
 0x51a   : > { %v767_v50 = vrot.slane %v766_v46, 1  ;;  %v781_v51 = vrot.slane %v780_v47, 1  ;;  %v795_v52 = vrot.slane %v794_v48, 1  ;;  %v809_v53 = vrot.slane %v808_v49, 1 }
 0x51c   : > { %vm768_vm3 = vcmp.gt.s32.totalorder %v766_v46, %v767_v50  ;;  %vm782_vm4 = vcmp.gt.s32.totalorder %v780_v47, %v781_v51  ;;  %vm796_vm5 = vcmp.gt.s32.totalorder %v794_v48, %v795_v52  ;;  %vm810_vm6 = vcmp.gt.s32.totalorder %v808_v49, %v809_v53 }
 0x51d   : > { %v769_v54 = vsel %vm768_vm3, %v766_v46, %v767_v50  ;;  %v783_v55 = vsel %vm782_vm4, %v780_v47, %v781_v51  ;;  %v797_v56 = vsel %vm796_vm5, %v794_v48, %v795_v52  ;;  %v811_v57 = vsel %vm810_vm6, %v808_v49, %v809_v53 }
 0x51e   : > { %1579 = vpush %v769_v54 }
 0x51f   : > { %1581 = vpush %v783_v55 }
 0x520   : > { %1583 = vpush %v797_v56 }
 0x521   : > { %1585 = vpush %v811_v57 }
 0x546   : > { %s1572_s21 = spop %1571 }
 0x547   : > { %s816_s24 = scalar_lea.vmem %s2153_s7, %s1572_s21  ;;  %s1574_s16 = spop %1573 }
 0x548   : > { %v834_v58 = vld [vmem:[%s816_s24] sm:$0x1]  ;;  %s1576_s25 = spop %1575 }
 0x549   : > { %835 = vst [vmem:[#allocation4] sm:$0x1] %v834_v58  ;;  %s1578_s26 = spop %1577 }
 0x54f   : > { %s1580_s27 = spop %1579 }
 0x550   : > { %s1582_s28 = spop %1581 }
 0x551   : > { %s1584_s29 = spop %1583 }
 0x552   : > { %s1586_s18 = spop %1585 }
 0x553   : > { %860 = vsyncadd [#allocation9], 16  ;;  %s862_s1 = scalar_lea.vmem %s2153_s7, %s1574_s16 }
 0x554   : > { %v882_v59 = vld [vmem:[%s862_s1] sm:$0x1] }
 0x555   : > { %883 = vst [vmem:[#allocation4 + $0x1] sm:$0x1] %v882_v59 }
 0x556   : > { %908 = vsyncadd [#allocation9 + $0x1], 16  ;;  %s910_s21 = scalar_lea.vmem %s2153_s7, %s1576_s25 }
 0x557   : > { %v930_v60 = vld [vmem:[%s910_s21] sm:$0x1] }
 0x558   : > { %931 = vst [vmem:[#allocation4 + $0x2] sm:$0x1] %v930_v60 }
 0x559   : > { %956 = vsyncadd [#allocation9 + $0x2], 16  ;;  %s958_s3 = scalar_lea.vmem %s2153_s7, %s1578_s26 }
 0x55a   : > { %v978_v61 = vld [vmem:[%s958_s3] sm:$0x1] }
 0x55b   : > { %979 = vst [vmem:[#allocation4 + $0x3] sm:$0x1] %v978_v61 }
 0x55c   : > { %1004 = vsyncadd [#allocation9 + $0x3], 16  ;;  %s1006_s1 = scalar_lea.vmem %s2153_s7, %s1580_s27 }
 0x55d   : > { %v1026_v62 = vld [vmem:[%s1006_s1] sm:$0x1] }
 0x55e   : > { %1027 = vst [vmem:[#allocation4 + $0x4] sm:$0x1] %v1026_v62 }
 0x55f   : > { %1052 = vsyncadd [#allocation9 + $0x4], 16  ;;  %s1054_s25 = scalar_lea.vmem %s2153_s7, %s1582_s28 }
 0x560   : > { %v1074_v63 = vld [vmem:[%s1054_s25] sm:$0x1] }
 0x561   : > { %1075 = vst [vmem:[#allocation4 + $0x5] sm:$0x1] %v1074_v63 }
 0x562   : > { %1100 = vsyncadd [#allocation9 + $0x5], 16  ;;  %s1102_s3 = scalar_lea.vmem %s2153_s7, %s1584_s29 }
 0x563   : > { %v1122_v0 = vld [vmem:[%s1102_s3] sm:$0x1] }
 0x564   : > { %1123 = vst [vmem:[#allocation4 + $0x6] sm:$0x1] %v1122_v0 }
 0x565   : > { %1148 = vsyncadd [#allocation9 + $0x6], 16  ;;  %s1150_s27 = scalar_lea.vmem %s2153_s7, %s1586_s18 }
 0x566   : > { %v1170_v1 = vld [vmem:[%s1150_s27] sm:$0x1] }
 0x567   : > { %1171 = vst [vmem:[#allocation4 + $0x7] sm:$0x1] %v1170_v1 }
 0x568   : > { %1196 = vsyncadd [#allocation9 + $0x7], 16 }
 0x569 PF: > { %p1480_p11 = scmp.ne.s32.totalorder %s1906_s13, 6 }
 0x56a   : > { %v1201_v2 = vld [vmem:[#allocation5] sm:$0xff] (!%p1480_p11) }
 0x56b   : > { %1200 = sbr.rel (%p1480_p11) target bundleno = 1394 (0x572), region = 342  ;;  %v1202_v3 = vmul.f32 (!%p1480_p11), 0.14285715, %v1201_v2 }
 0x56d   : > { %1203 = vst.msk [vmem:[#allocation13] sm:$0xff] (!%p1480_p11), %vm381_vm1, %v1202_v3 }
 0x572 PF: > { %s1482_s28 = sshll.u32 %s1906_s13, 7  ;;  %s2171_s23 = scalar_lea.vmem [#allocation11], %s1938_s22 }
 0x573   : > { %s2084_s18 = scalar_lea.hbm %s2154_s8, %s1482_s28  ;;  %s1218_s24 = sshll.u32 %s2171_s23, 4  ;;  %s1219_s24 = int_to_ptr.vmem [resolvable:$true] %s1218_s24 }
 0x574   : > { %s2172_s0 = sand.u32 1, %s1817_s10   ;;  %s1693_s16 = scalar_lea.vmem %s1219_s24, 128 }
 0x575   : > { %s1205_s1 = scalar_lea.sflag [#allocation12], %s2172_s0  ;;  %p1694_p12 = scmp.ne.s32.totalorder %s1219_s24, %s1693_s16 }
 0x576   : > { %s1833_s2 = smov [#allocation11]  }
 0x577   : > { %p1695_p13 = pnand %p1694_p12, %p1925_p5  ;;  %s1697_s25 = sshll.u32 %s1833_s2, 4  ;;  %s1698_s25 = int_to_ptr.vmem [resolvable:$false] %s1697_s25 }
 0x578   : > { %s1699_s14 = scalar_lea.vmem %s1698_s25, 256  ;;  %p1700_p1 = scmp.lt.s32.totalorder %s1219_s24, %s1698_s25 }
 0x579   : > { %p1696_p0 = pneg %p1695_p13  ;;  %p1701_p3 = scmp.lt.s32.totalorder %s1699_s14, %s1693_s16 }
 0x57b   : > { %p1702_p4 = por %p1701_p3, %p1700_p1 }
 0x57d   : > { %p1703_p7 = pnand %p1702_p4, %p1696_p0 }
 0x57f   : > { %1706 = shalt.err (!%p1703_p7)
}
 0x580   : > { %s1707_s22 = scalar_lea.hbm %s2084_s18, 128  ;;  %s1711_s26 = scalar_lea.hbm %s2154_s8, 896 }
 0x581   : > { %p1708_p8 = scmp.ne.s32.totalorder %s2084_s18, %s1707_s22  ;;  %p1712_p11 = scmp.lt.u32.totalorder %s2084_s18, %s2154_s8 }
 0x582   : > { %p1713_p12 = scmp.lt.u32.totalorder %s1711_s26, %s1707_s22  ;;  %p1715_p0 = scmp.lt.u32.totalorder %s1707_s22, %s2084_s18 }
 0x583   : > { %p1709_p9 = pnand %p1708_p8, %p1925_p5 }
 0x584   : > { %p1714_p13 = por %p1713_p12, %p1712_p11 }
 0x585   : > { %p1710_p10 = pneg %p1709_p9 }
 0x586   : > { %p1716_p1 = por %p1715_p0, %p1714_p13 }
 0x588   : > { %p1717_p3 = pnand %p1716_p1, %p1710_p10 }
 0x58a   : > { %1720 = shalt.err (!%p1717_p3)
}
 0x58b   : > { %1600 = dma.vmem_to_hbm [thread:$0]  (%p1925_p5), %s1219_s24, 128, %s2084_s18, %s1205_s1  }
 0x58c   : > { %s1834_s28 = smov [#allocation13]  }
 0x58d   : > { %s1229_s29 = sshll.u32 %s1834_s28, 4  ;;  %s1230_s29 = int_to_ptr.vmem [resolvable:$true] %s1229_s29 }
 0x58e   : > { %s1721_s21 = scalar_lea.vmem %s1230_s29, 128  ;;  %p1728_p9 = scmp.lt.s32.totalorder %s1230_s29, %s1230_s29 }
 0x58f   : > { %p1722_p4 = scmp.ne.s32.totalorder %s1230_s29, %s1721_s21  ;;  %p1729_p6 = scmp.lt.s32.totalorder %s1721_s21, %s1721_s21 }
 0x591   : > { %p1723_p7 = pnand %p1722_p4, %p147_p2  ;;  %p1730_p11 = por %p1729_p6, %p1728_p9 }
 0x593   : > { %p1724_p8 = pneg %p1723_p7 }
 0x595   : > { %p1731_p12 = pnand %p1730_p11, %p1724_p8 }
 0x597   : > { %1734 = shalt.err (!%p1731_p12)
}
 0x598   : > { %s1735_s19 = scalar_lea.hbm %s2155_s9, 128 }
 0x599   : > { %p1736_p5 = scmp.ne.s32.totalorder %s2155_s9, %s1735_s19  ;;  %p1741_p0 = scmp.lt.u32.totalorder %s1735_s19, %s2155_s9 }
 0x59b   : > { %p1737_p10 = pnand %p1736_p5, %p147_p2 }
 0x59d   : > { %p1738_p13 = pneg %p1737_p10 }
 0x59f   : > { %p1743_p1 = pnand %p1741_p0, %p1738_p13 }
 0x5a1   : > { %1746 = shalt.err (!%p1743_p1)
}
 0x5a2   : > { %1602 = dma.vmem_to_hbm [thread:$0]  (%p147_p2), %s1230_s29, 128, %s2155_s9, [#allocation14]  }
 0x5a3   : > { %1804 = dma.done.wait (%p147_p2), [#allocation14], 128  }
 0x5a4   : > { %1806 = vsyncadd (%p147_p2), [#allocation14], 4294967168 }
 0x5a5 PF: > { %p1615_p6 = scmp.ge.s32.totalorder %s1825_s12, 2  ;;  %s1245_s14 = sand.u32 1, %s1813_s30  }
 0x5a6   : > { %p2173_p3 = scmp.ne.s32.totalorder %s2164_s20, 0  ;;  %s1246_s22 = scalar_lea.sflag [#allocation12], %s1245_s14 }
 0x5a8   : > { %p1607_p4 = pnand %p1615_p6, %p2173_p3 }
 0x5aa   : > { %1808 = dma.done.wait (!%p1607_p4), %s1246_s22, 128  }
 0x5ab   : > { %1810 = vsyncadd (!%p1607_p4), %s1246_s22, 4294967168  ;;  %s2174_s17 = sld [smem:[#allocation40_spill]]  ;;  %p21_p7 = scmp.ge.s32.totalorder %s1910_s15, 9  }
 0x5ac   : > { %s2175_s30 = smov %s1817_s10  ;;  %s2176_s10 = smov %s1821_s11 }
 0x5ad   : > { %s2178_s12 = smov %s1910_s15  ;;  %23 = sbr.rel (!%p21_p7) target bundleno = 10 (0xa), region = 517 }
 0x5b1   : > { %s2177_s11 = smov %s2174_s17 }
 0x5b4   :  { %1251 = vsyncpa [#allocation12], 1 }
 0x5b5   :  { %1253 = vsyncpa [#allocation12 + $0x1], 1 }
 0x5b6   :  { %1254 = vsyncpa [#allocation14], 1 }
 0x5b7   :  { %1255 = vsyncmov [#allocation8] }
 0x5ba   :  { %s1256_s12 = vpop.sfrf %1255 }
 0x5bb   :  { %p1487_p2 = scmp.ne.s32.totalorder %s1256_s12, 0 }
 0x5bd   :  { %1260 = shalt.err (%p1487_p2)  }
 0x5be   :  { %1262 = vsyncmov [#allocation8 + $0x1] }
 0x5c1   :  { %s1263_s13 = vpop.sfrf %1262 }
 0x5c2   :  { %p1488_p8 = scmp.ne.s32.totalorder %s1263_s13, 0 }
 0x5c4   :  { %1267 = shalt.err (%p1488_p8)  }
 0x5c5   :  { %1268 = vsyncmov [#allocation9] }
 0x5c8   :  { %s1269_s20 = vpop.sfrf %1268 }
 0x5c9   :  { %p1489_p9 = scmp.ne.s32.totalorder %s1269_s20, 0 }
 0x5cb   :  { %1273 = shalt.err (%p1489_p9)  }
 0x5cc   :  { %1275 = vsyncmov [#allocation9 + $0x1] }
 0x5cf   :  { %s1276_s3 = vpop.sfrf %1275 }
 0x5d0   :  { %p1490_p11 = scmp.ne.s32.totalorder %s1276_s3, 0 }
 0x5d2   :  { %1280 = shalt.err (%p1490_p11)  }
 0x5d3   :  { %1282 = vsyncmov [#allocation9 + $0x2] }
 0x5d6   :  { %s1283_s5 = vpop.sfrf %1282 }
 0x5d7   :  { %p1491_p12 = scmp.ne.s32.totalorder %s1283_s5, 0 }
 0x5d9   :  { %1287 = shalt.err (%p1491_p12)  }
 0x5da   :  { %1289 = vsyncmov [#allocation9 + $0x3] }
 0x5dd   :  { %s1290_s6 = vpop.sfrf %1289 }
 0x5de   :  { %p1492_p5 = scmp.ne.s32.totalorder %s1290_s6, 0 }
 0x5e0   :  { %1294 = shalt.err (%p1492_p5)  }
 0x5e1   :  { %1296 = vsyncmov [#allocation9 + $0x4] }
 0x5e4   :  { %s1297_s7 = vpop.sfrf %1296 }
 0x5e5   :  { %p1493_p10 = scmp.ne.s32.totalorder %s1297_s7, 0 }
 0x5e7   :  { %1301 = shalt.err (%p1493_p10)  }
 0x5e8   :  { %1303 = vsyncmov [#allocation9 + $0x5] }
 0x5eb   :  { %s1304_s8 = vpop.sfrf %1303 }
 0x5ec   :  { %p1494_p13 = scmp.ne.s32.totalorder %s1304_s8, 0 }
 0x5ee   :  { %1308 = shalt.err (%p1494_p13)  }
 0x5ef   :  { %1310 = vsyncmov [#allocation9 + $0x6] }
 0x5f2   :  { %s1311_s9 = vpop.sfrf %1310 }
 0x5f3   :  { %p1495_p0 = scmp.ne.s32.totalorder %s1311_s9, 0 }
 0x5f5   :  { %1315 = shalt.err (%p1495_p0)  }
 0x5f6   :  { %1317 = vsyncmov [#allocation9 + $0x7] }
 0x5f9   :  { %s1318_s30 = vpop.sfrf %1317 }
 0x5fa   :  { %p1496_p1 = scmp.ne.s32.totalorder %s1318_s30, 0 }
 0x5fc   :  { %1322 = shalt.err (%p1496_p1)  }

</bundles_post_ra>
